<compile_context>
chip_gen: v7x
topology: tpu7x:2x2x1
jax: 0.10.0
libtpu: 0.0.40
codegen_flags: <defaults>
</compile_context>

<pallas_src>
import functools

import jax
import jax.numpy as jnp
from jax.experimental import pallas as pl
from jax.experimental.pallas import tpu as pltpu


# ---------------------------------------------------------------------------
# Kernel
# ---------------------------------------------------------------------------
def _bce_rowsum_kernel(pred_ref, target_ref, out_ref, acc_ref, *,
                       n_cols, tile_d, inv_d, mask_cols):
    """Accumulates per-row BCEWithLogits sums over the D (column) grid axis.

    Grid = (row_blocks, col_blocks); the col axis is innermost ("arbitrary").
    Rows >= N in a partial tail row-block produce garbage means in their lanes;
    those lanes are sliced off by the wrapper (reshape(-1)[:N]).
    """
    k = pl.program_id(1)

    @pl.when(k == 0)
    def _init():
        acc_ref[...] = jnp.zeros_like(acc_ref)

    x = pred_ref[...].astype(jnp.float32)
    y = target_ref[...].astype(jnp.float32)
    # Numerically-stable BCEWithLogits (matches torch.nn.BCEWithLogitsLoss, reduction='none'):
    #   loss = max(x, 0) - x * y + log(1 + exp(-|x|))
    loss = jnp.maximum(x, 0.0) - x * y + jnp.log1p(jnp.exp(-jnp.abs(x)))

    if mask_cols:
        # D % tile_d != 0: zero out the garbage columns of the partial tail block so
        # valid rows' sums are not corrupted (partial tail reads are undefined).
        col_ids = k * tile_d + jax.lax.broadcasted_iota(jnp.int32, loss.shape, 1)
        loss = jnp.where(col_ids < n_cols, loss, 0.0)

    # Lane-dense accumulate: rows mapped onto the lane axis of a (1, 1, tile_n) scratch.
    acc_ref[...] += jnp.sum(loss, axis=-1)[None, None, :]

    @pl.when(k == pl.num_programs(1) - 1)
    def _finalize():
        out_ref[...] = acc_ref[...] * inv_d


# ---------------------------------------------------------------------------
# Tiling / VMEM heuristics
# ---------------------------------------------------------------------------
def _vmem_capacity_bytes():
    try:
        return int(pltpu.get_tpu_info().vmem_capacity_bytes)
    except Exception:
        return 64 << 20  # conservative default: v7x per-TC VMEM


def _default_block_budget_bytes():
    # ~14 MiB per input block on 128 MiB-VMEM chips (v5e/v6e), ~7 MiB on 64 MiB (v7x).
    return (14 << 20) if _vmem_capacity_bytes() >= (128 << 20) else (7 << 20)


def _align_up(v, a):
    return ((v + a - 1) // a) * a


def _choose_tiles(n_rows, n_cols, itemsize, budget_bytes):
    """Pick (tile_n, tile_d) so one (tile_n, tile_d) input block ~fits the budget."""
    row_align = max(8, 32 // max(1, itemsize))       # f32 -> 8, bf16 -> 16
    full_row_bytes = max(1, n_cols * itemsize)

    if row_align * full_row_bytes <= budget_bytes:
        # Full rows fit: no D split.
        tile_d = n_cols
        tile_n = max(row_align, budget_bytes // full_row_bytes)
        # >= 2 row blocks when possible (both v7x TensorCores get work).
        tile_n = min(tile_n,
                     _align_up(pl.cdiv(n_rows, 2), row_align),
                     _align_up(n_rows, row_align))
        if tile_n >= 128:
            tile_n = (tile_n // 128) * 128           # multiple of 128 -> unmasked lane stores
        else:
            tile_n = (tile_n // row_align) * row_align
        tile_n = max(tile_n, row_align)
    else:
        # Wide rows: split D across a trailing grid axis (partial-sum accumulator).
        tile_n = min(128,
                     _align_up(n_rows, row_align),
                     _align_up(pl.cdiv(n_rows, 2), row_align))
        tile_n = max(row_align, (tile_n // row_align) * row_align)
        tile_d = (budget_bytes // (tile_n * itemsize) // 128) * 128
        tile_d = max(128, tile_d)
        tile_d = min(tile_d, _align_up(n_cols, 128))
    return int(tile_n), int(tile_d)


# ---------------------------------------------------------------------------
# Pallas wrapper: per-row BCEWithLogits means, shape (N,)
# ---------------------------------------------------------------------------
def _bce_row_means_pallas(pred, target, block_budget_bytes=None):
    N, D = pred.shape
    itemsize = max(jnp.dtype(pred.dtype).itemsize, jnp.dtype(target.dtype).itemsize)
    if block_budget_bytes is None:
        block_budget_bytes = _default_block_budget_bytes()

    tile_n, tile_d = _choose_tiles(N, D, itemsize, block_budget_bytes)
    num_row_blocks = pl.cdiv(N, tile_n)
    num_col_blocks = pl.cdiv(D, tile_d)

    # VMEM budget: 2 inputs x 2 pipeline buffers + output + scratch + headroom,
    # capped at 3/4 of physical VMEM (48 MiB on v7x, 96 MiB on v5e/v6e).
    in_block_bytes = tile_n * tile_d * itemsize
    out_block_bytes = tile_n * 4
    scratch_bytes = tile_n * 4
    vmem_cap = _vmem_capacity_bytes()
    vmem_limit = 4 * in_block_bytes + 2 * out_block_bytes + scratch_bytes + (4 << 20)
    vmem_limit = int(min(max(vmem_limit, 32 << 20), (vmem_cap * 3) // 4))

    kernel = functools.partial(
        _bce_rowsum_kernel,
        n_cols=D,
        tile_d=tile_d,
        inv_d=1.0 / float(D),
        mask_cols=(D % tile_d != 0),
    )

    row_means = pl.pallas_call(
        kernel,
        out_shape=jax.ShapeDtypeStruct((num_row_blocks, 1, tile_n), jnp.float32),
        grid=(num_row_blocks, num_col_blocks),
        in_specs=[
            pl.BlockSpec((tile_n, tile_d), lambda i, k: (i, k)),
            pl.BlockSpec((tile_n, tile_d), lambda i, k: (i, k)),
        ],
        out_specs=pl.BlockSpec((1, 1, tile_n), lambda i, k: (i, 0, 0)),
        scratch_shapes=[pltpu.VMEM((1, 1, tile_n), jnp.float32)],
        compiler_params=pltpu.CompilerParams(
            dimension_semantics=("parallel", "arbitrary"),
            vmem_limit_bytes=vmem_limit,
        ),
        cost_estimate=pl.CostEstimate(
            flops=5 * N * D,
            transcendentals=2 * N * D,
            bytes_accessed=2 * N * D * itemsize + 4 * N,
        ),
    )(pred, target)

    # Tail lanes of the last (partial) row block are garbage; [:N] discards them.
    return row_means.reshape(-1)[:N]


# ---------------------------------------------------------------------------
# Public forward: matches the PyTorch BCEWithLogitsLoss module
# ---------------------------------------------------------------------------
def bce_with_logits_loss(pred, target, *, loss_weight=1.0, clip_rate=0.0,
                         min_kernel_elements=1 << 20, block_budget_bytes=None):
    """Forward pass of the BCEWithLogitsLoss module. Returns a scalar float32.

    Note: the PyTorch module stores `loss_weight` but never applies it in forward,
    so we keep the same semantics (accepted but unused).
    """
    del loss_weight  # intentionally unused, mirroring the reference module
    assert pred.shape == target.shape and pred.ndim == 2
    N, D = pred.shape

    if N * D < min_kernel_elements:
        # Small-input fallback: pallas_call launch/pipeline-fill overhead dominates;
        # XLA's fused elementwise + reduce is faster below ~1M elements.
        x = pred.astype(jnp.float32)
        y = target.astype(jnp.float32)
        loss = jnp.maximum(x, 0.0) - x * y + jnp.log1p(jnp.exp(-jnp.abs(x)))
        bce_loss = jnp.mean(loss, axis=-1)
    else:
        bce_loss = _bce_row_means_pallas(pred, target, block_budget_bytes)

    if clip_rate == 0:
        return jnp.mean(bce_loss)

    # clip_rate > 0 path (matches torch: both org_mean and the denominator are detached).
    remove_num = int(clip_rate * N)
    org_mean = jax.lax.stop_gradient(jnp.mean(bce_loss))
    _, idx = jax.lax.top_k(bce_loss, remove_num)
    clipped = bce_loss.at[idx].set(0.0)
    clipped_mean = jnp.mean(clipped)
    return clipped_mean * org_mean / jax.lax.stop_gradient(clipped_mean)


# ---------------------------------------------------------------------------
# Pure-JAX reference
# ---------------------------------------------------------------------------
def _reference(pred, target, clip_rate=0.0):
    x = pred.astype(jnp.float32)
    y = target.astype(jnp.float32)
    loss = jnp.maximum(x, 0.0) - x * y + jnp.log1p(jnp.exp(-jnp.abs(x)))
    bce = jnp.mean(loss, axis=-1)
    if clip_rate == 0:
        return jnp.mean(bce)
    remove_num = int(clip_rate * bce.shape[0])
    org_mean = jax.lax.stop_gradient(jnp.mean(bce))
    _, idx = jax.lax.top_k(bce, remove_num)
    clipped = bce.at[idx].set(0.0)
    clipped_mean = jnp.mean(clipped)
    return clipped_mean * org_mean / jax.lax.stop_gradient(clipped_mean)


if __name__ == "__main__":
    key = jax.random.PRNGKey(0)
    k1, k2 = jax.random.split(key)

    # --- Pallas path (forced via min_kernel_elements=0): N=200 is not a multiple of the
    #     chosen row tile -> partial tail row block + >=2 row blocks, no host-side pad. ---
    N, D = 200, 384
    pred = jax.random.normal(k1, (N, D), dtype=jnp.float32)
    target = (jax.random.uniform(k2, (N, D)) > 0.5).astype(jnp.float32)

    out = jax.block_until_ready(
        bce_with_logits_loss(pred, target, clip_rate=0.0, min_kernel_elements=0))
    ref = _reference(pred, target, clip_rate=0.0)
    assert jnp.allclose(out, ref, atol=1e-5, rtol=1e-5), (out, ref)

    out_clip = jax.block_until_ready(
        bce_with_logits_loss(pred, target, clip_rate=0.25, min_kernel_elements=0))
    ref_clip = _reference(pred, target, clip_rate=0.25)
    assert jnp.allclose(out_clip, ref_clip, atol=1e-5, rtol=1e-5), (out_clip, ref_clip)

    # --- bf16 inputs (halves HBM traffic; kernel casts to f32 internally). ---
    pred_bf = pred.astype(jnp.bfloat16)
    target_bf = target.astype(jnp.bfloat16)
    out_bf = jax.block_until_ready(
        bce_with_logits_loss(pred_bf, target_bf, min_kernel_elements=0))
    ref_bf = _reference(pred_bf.astype(jnp.float32), target_bf.astype(jnp.float32))
    assert jnp.allclose(out_bf, ref_bf, atol=1e-5, rtol=1e-5), (out_bf, ref_bf)

    # --- D-split path: artificially small block budget forces the trailing 'arbitrary'
    #     column grid axis + accumulator + partial-tail-column masking (D=400 % 128 != 0). ---
    D2 = 400
    pred_w = jax.random.normal(k1, (N, D2), dtype=jnp.float32)
    target_w = (jax.random.uniform(k2, (N, D2)) > 0.5).astype(jnp.float32)
    out_w = jax.block_until_ready(
        bce_with_logits_loss(pred_w, target_w, min_kernel_elements=0,
                             block_budget_bytes=8 << 10))
    ref_w = _reference(pred_w, target_w)
    assert jnp.allclose(out_w, ref_w, atol=1e-5, rtol=1e-5), (out_w, ref_w)

    # --- Tiny-input fallback path (default min_kernel_elements). ---
    n2, d2 = 8, 32
    p2 = jax.random.normal(k1, (n2, d2), dtype=jnp.float32)
    t2 = (jax.random.uniform(k2, (n2, d2)) > 0.5).astype(jnp.float32)
    out2 = jax.block_until_ready(bce_with_logits_loss(p2, t2))
    assert jnp.allclose(out2, _reference(p2, t2), atol=1e-5, rtol=1e-5)

    print("KERNEL_OK")
</pallas_src>

<mosaic_0001>
module attributes {stable_mosaic.version = 11 : i64} {
  func.func @_bce_rowsum_kernel(%arg0: i32, %arg1: i32, %arg2: memref<104x384xf32, #tpu.memory_space<vmem>>, %arg3: memref<104x384xf32, #tpu.memory_space<vmem>>, %arg4: memref<1x1x104xf32, #tpu.memory_space<vmem>>, %arg5: memref<1x1x104xf32, #tpu.memory_space<vmem>>) attributes {dimension_semantics = [#tpu.dimension_semantics<parallel>, #tpu.dimension_semantics<arbitrary>], iteration_bounds = array<i64: 2, 1>, scalar_prefetch = 0 : i64, scratch_operands = 1 : i64, tpu.core_type = #tpu.core_type<tc>, window_params = [{transform_indices = @transform_0, window_bounds = array<i64: 104, 384>}, {transform_indices = @transform_1, window_bounds = array<i64: 104, 384>}, {transform_indices = @transform_2, window_bounds = array<i64: 1, 1, 104>}]} {
    %c0_i32 = arith.constant 0 : i32
    %0 = arith.cmpi eq, %arg1, %c0_i32 : i32
    %1 = arith.extui %0 : i1 to i32
    %c0_i32_0 = arith.constant 0 : i32
    %2 = arith.cmpi ne, %1, %c0_i32_0 : i32
    scf.if %2 {
      %cst_14 = arith.constant 0.000000e+00 : f32
      %23 = vector.broadcast %cst_14 : f32 to vector<1x1x104xf32>
      %c0_15 = arith.constant 0 : index
      %c0_16 = arith.constant 0 : index
      %c0_17 = arith.constant 0 : index
      %24 = vector.load %arg5[%c0_15, %c0_16, %c0_17] : memref<1x1x104xf32, #tpu.memory_space<vmem>>, vector<1x1x104xf32>
      tpu.vector_store %arg5[%c0_15, %c0_16, %c0_17], %23 {strides = array<i32>} : memref<1x1x104xf32, #tpu.memory_space<vmem>>, vector<1x1x104xf32>,
    } else {
    }
    %c0 = arith.constant 0 : index
    %c0_1 = arith.constant 0 : index
    %3 = vector.load %arg2[%c0, %c0_1] : memref<104x384xf32, #tpu.memory_space<vmem>>, vector<104x384xf32>
    %c0_2 = arith.constant 0 : index
    %c0_3 = arith.constant 0 : index
    %4 = vector.load %arg3[%c0_2, %c0_3] : memref<104x384xf32, #tpu.memory_space<vmem>>, vector<104x384xf32>
    %cst = arith.constant 0.000000e+00 : f32
    %5 = vector.broadcast %cst : f32 to vector<104x384xf32>
    %6 = arith.maximumf %3, %5 : vector<104x384xf32>
    %7 = arith.mulf %3, %4 : vector<104x384xf32>
    %8 = arith.subf %6, %7 : vector<104x384xf32>
    %9 = math.absf %3 : vector<104x384xf32>
    %cst_4 = arith.constant 0.000000e+00 : f32
    %10 = vector.broadcast %cst_4 : f32 to vector<104x384xf32>
    %11 = arith.subf %10, %9 : vector<104x384xf32>
    %12 = math.exp %11 : vector<104x384xf32>
    %13 = math.log1p %12 : vector<104x384xf32>
    %14 = arith.addf %8, %13 : vector<104x384xf32>
    %c0_5 = arith.constant 0 : index
    %c0_6 = arith.constant 0 : index
    %c0_7 = arith.constant 0 : index
    %15 = vector.load %arg5[%c0_5, %c0_6, %c0_7] : memref<1x1x104xf32, #tpu.memory_space<vmem>>, vector<1x1x104xf32>
    %cst_8 = arith.constant dense<0.000000e+00> : vector<104xf32>
    %16 = vector.multi_reduction <add>, %14, %cst_8 [1] : vector<104x384xf32> to vector<104xf32>
    %17 = vector.shape_cast %16 : vector<104xf32> to vector<1x1x104xf32>
    %18 = arith.addf %15, %17 : vector<1x1x104xf32>
    %c0_9 = arith.constant 0 : index
    %c0_10 = arith.constant 0 : index
    %c0_11 = arith.constant 0 : index
    %19 = vector.load %arg5[%c0_9, %c0_10, %c0_11] : memref<1x1x104xf32, #tpu.memory_space<vmem>>, vector<1x1x104xf32>
    tpu.vector_store %arg5[%c0_9, %c0_10, %c0_11], %18 {strides = array<i32>} : memref<1x1x104xf32, #tpu.memory_space<vmem>>, vector<1x1x104xf32>,
    %c0_i32_12 = arith.constant 0 : i32
    %20 = arith.cmpi eq, %arg1, %c0_i32_12 : i32
    %21 = arith.extui %20 : i1 to i32
    %c0_i32_13 = arith.constant 0 : i32
    %22 = arith.cmpi ne, %21, %c0_i32_13 : i32
    scf.if %22 {
      %c0_14 = arith.constant 0 : index
      %c0_15 = arith.constant 0 : index
      %c0_16 = arith.constant 0 : index
      %23 = vector.load %arg5[%c0_14, %c0_15, %c0_16] : memref<1x1x104xf32, #tpu.memory_space<vmem>>, vector<1x1x104xf32>
      %cst_17 = arith.constant 0.00260416674 : f32
      %24 = vector.broadcast %cst_17 : f32 to vector<1x1x104xf32>
      %25 = arith.mulf %23, %24 : vector<1x1x104xf32>
      %c0_18 = arith.constant 0 : index
      %c0_19 = arith.constant 0 : index
      %c0_20 = arith.constant 0 : index
      %26 = vector.load %arg4[%c0_18, %c0_19, %c0_20] : memref<1x1x104xf32, #tpu.memory_space<vmem>>, vector<1x1x104xf32>
      tpu.vector_store %arg4[%c0_18, %c0_19, %c0_20], %25 {strides = array<i32>} : memref<1x1x104xf32, #tpu.memory_space<vmem>>, vector<1x1x104xf32>,
    } else {
    }
    return
  }
  func.func @transform_0(%arg0: i32, %arg1: i32) -> (i32, i32) {
    %c0_i32 = arith.constant 0 : i32
    return %arg0, %arg1 : i32, i32
  }
  func.func @transform_1(%arg0: i32, %arg1: i32) -> (i32, i32) {
    %c0_i32 = arith.constant 0 : i32
    return %arg0, %arg1 : i32, i32
  }
  func.func @transform_2(%arg0: i32, %arg1: i32) -> (i32, i32, i32) {
    %c0_i32 = arith.constant 0 : i32
    %c0_i32_0 = arith.constant 0 : i32
    %c0_i32_1 = arith.constant 0 : i32
    return %arg0, %c0_i32, %c0_i32_0 : i32, i32, i32
  }
}

</mosaic_0001>

<bundles_post_ra>
// kernel: tpu_custom_call.1
= control target key start
LH: loop header
LB: loop body
LE: loop exit
PB: predicated region body
PF: predicated region fallthrough
CT: control target
= control target key end

     0   :  { %7 = vsyncpa [#allocation4], 0  ;;  %s3933_s0 = inlined_call_operand.hbm [shape: f32[200,384], index: 0, kind: input, shape index: {}]   ;;  %s3934_s1 = inlined_call_operand.hbm [shape: f32[200,384], index: 1, kind: input, shape index: {}]   ;;  %s3935_s2 = inlined_call_operand.hbm [shape: f32[2,1,104], index: 2, kind: output, shape index: {}]  }
   0x1   :  { %9 = vsyncpa [#allocation4 + $0x1], 0 }
   0x2   :  { %10 = vsyncpa [#allocation7], 0 }
   0x3   :  { %12 = vsyncpa [#allocation7 + $0x1], 0 }
   0x4   :  { %13 = vsyncpa [#allocation5], 0 }
   0x5   :  { %15 = vsyncpa [#allocation5 + $0x1], 0  ;;  %s2802_s9 = smov 0   ;;  %s2804_s10 = smov 0  }
   0x6   :  { %s2806_s11 = smov 0   ;;  %s2808_s12 = smov 0  }
   0x7   :  { %s2810_s13 = smov 0   ;;  %s2812_s14 = smov 0  }
   0x8 LB: > { %s2386_s15 = sadd.s32 4294967295, %s2775_s14   ;;  %s2387_s16 = sadd.s32 4294967294, %s2775_s14   ;;  %s2775_s14 = sphi %s2812_s14, %s21_s14   ;;  %s2771_s13 = sphi %s2810_s13, %s4027_s13   ;;  %s2767_s12 = sphi %s2808_s12, %s4026_s12   ;;  %s2763_s11 = sphi %s2806_s11, %s4025_s11   ;;  %s2759_s10 = sphi %s2804_s10, %s4024_s10   ;;  %s2755_s9 = sphi %s2802_s9, %s4023_s9  }
   0x9   : > { %s33_s17 = sadd.s32 1, %s2771_s13  ;;  %s42_s18 = sadd.s32 1, %s2763_s11 }
   0xa   : > { %p35_p0 = scmp.ge.s32.totalorder %s33_s17, 2  ;;  %p49_p1 = scmp.ne.s32.totalorder %s2763_s11, %s2759_s10 }
   0xb   : > { %p50_p2 = scmp.eq.s32.totalorder %s2775_s14, 0  ;;  %p55_p3 = scmp.ne.s32.totalorder %s2759_s10, %s2755_s9 }
   0xc   : > { %s4029_s17 = smov (%p35_p0, %s33_s17), 0  ;;  %p56_p5 = scmp.eq.s32.totalorder %s2386_s15, 0 }
   0xd   : > { %p2843_p4 = por %p50_p2, %p49_p1  ;;  %s37_s20 = ssub.s32 %s2771_s13, %s4029_s17 }
   0xe   : > { %p107_p6 = scmp.eq.s32.totalorder %s2386_s15, 1  ;;  %p40_p7 = scmp.eq.s32.totalorder %s37_s20, 0 }
   0xf   : > { %p2849_p8 = por %p56_p5, %p55_p3  ;;  %p113_p10 = scmp.eq.s32.totalorder %s2387_s16, 1 }
  0x10   : > { %p2853_p9 = por %p107_p6, %p49_p1  ;;  %p3936_p12 = scmp.ge.s32.totalorder %s2775_s14, 2 }
  0x11   : > { %s2858_s23 = scalar_select %p40_p7, %s2763_s11, %s42_s18  }
  0x12   : > { %s3940_s22 = scalar_select %p2853_p9, 1, 0 }
  0x13   : > { %p2860_p11 = por %p113_p10, %p55_p3  ;;  %129 = sbr.rel (%p3936_p12) target bundleno = 98 (0x62), region = 16 }
  0x15   : > { %s3941_s24 = scalar_select %p2860_p11, 1, 0 }
  0x1a   : > { %132 = sbr.rel (!%p2843_p4) target bundleno = 62 (0x3e), region = 20  ;;  %s133_s25 = sand.u32 (%p2843_p4), 1, %s2763_s11  }
  0x1b   : > { %s138_s26 = smul.u32 (%p2843_p4), 13, %s2771_s13  ;;  %s2874_s3 = scalar_lea.sflag (%p2843_p4), [#allocation4], %s133_s25 }
  0x1c   : > { %s2404_s27 = smul.u32 (%p2843_p4), 312, %s133_s25 }
  0x1d   : > { %s140_s28 = ssub.s32 (%p2843_p4), 25, %s138_s26 }
  0x1e   : > { %p141_p13 = scmp.lt.s32.totalorder (%p2843_p4), %s140_s28, 13  ;;  %s137_s4 = scalar_lea.vmem (%p2843_p4), [#allocation3], %s2404_s27 }
  0x21   : > { %s4031_s28 = smov (!%p141_p13, %s140_s28), 13 }
  0x22   : > { %s2871_s29 = smul.u32 384, %s4031_s28 }
  0x24   : > { %s146_s30 = ssub.s32 4992, %s2871_s29 }
  0x25   : > { %147 = vsyncadd %s2874_s3, %s146_s30  ;;  %p2392_p0 = scmp.ne.s32.totalorder %s2871_s29, 0  ;;  %s2417_s5 = smul.u32 4992, %s2771_s13 }
  0x26   : > { %s154_s6 = sshll.u32 %s137_s4, 4  ;;  %s2637_s25 = scalar_lea.hbm %s3933_s0, 9600  ;;  %s2884_s6 = int_to_ptr.vmem [resolvable:$true] %s154_s6 }
  0x27   : > { %s2882_s15 = scalar_lea.hbm %s3933_s0, %s2417_s5 }
  0x28   : > { %s2633_s16 = scalar_lea.hbm %s2882_s15, %s2871_s29  ;;  %p2638_p5 = scmp.lt.u32.totalorder %s2882_s15, %s3933_s0 }
  0x29   : > { %p2634_p1 = scmp.ne.s32.totalorder %s2882_s15, %s2633_s16  ;;  %p2639_p6 = scmp.lt.u32.totalorder %s2637_s25, %s2633_s16 }
  0x2a   : > { %p2641_p10 = scmp.lt.u32.totalorder %s2633_s16, %s2882_s15 }
  0x2b   : > { %p2635_p2 = pnand %p2634_p1, %p2392_p0  ;;  %p2640_p7 = por %p2639_p6, %p2638_p5 }
  0x2d   : > { %p2636_p3 = pneg %p2635_p2  ;;  %p2642_p13 = por %p2641_p10, %p2640_p7 }
  0x2f   : > { %p2643_p12 = pnand %p2642_p13, %p2636_p3 }
  0x31   : > { %2646 = shalt.err (!%p2643_p12)
}
  0x32   : > { %s2647_s28 = scalar_lea.vmem %s2884_s6, %s2871_s29  ;;  %s2777_s30 = smov [#allocation3]  }
  0x33   : > { %p2648_p1 = scmp.ne.s32.totalorder %s2884_s6, %s2647_s28  ;;  %s2651_s4 = sshll.u32 %s2777_s30, 4  ;;  %s2652_s4 = int_to_ptr.vmem [resolvable:$false] %s2651_s4 }
  0x34   : > { %s2653_s5 = scalar_lea.vmem %s2652_s4, 9984  ;;  %p2654_p9 = scmp.lt.s32.totalorder %s2884_s6, %s2652_s4 }
  0x35   : > { %p2649_p2 = pnand %p2648_p1, %p2392_p0  ;;  %p2655_p5 = scmp.lt.s32.totalorder %s2653_s5, %s2647_s28 }
  0x37   : > { %p2650_p11 = pneg %p2649_p2  ;;  %p2656_p6 = por %p2655_p5, %p2654_p9 }
  0x39   : > { %p2657_p7 = pnand %p2656_p6, %p2650_p11 }
  0x3b   : > { %2660 = shalt.err (!%p2657_p7)
}
  0x3c   : > { %s2778_s7 = smov 384   ;;  %s2779_s8 = smov 24  }
  0x3d   : > { %160 = dma.hbm_to_vmem [thread:$0]  (%p2392_p0), %s2882_s15, %s2871_s29, %s2884_s6, %s2874_s3, %s2778_s7, %s2778_s7, %s2779_s8  }
  0x3e PF: > { %163 = sbr.rel (!%p2843_p4) target bundleno = 98 (0x62), region = 24  ;;  %s164_s16 = sand.u32 (%p2843_p4), 1, %s2763_s11  }
  0x3f   : > { %s169_s18 = smul.u32 (%p2843_p4), 13, %s2771_s13  ;;  %s2918_s28 = scalar_lea.sflag (%p2843_p4), [#allocation7], %s164_s16 }
  0x40   : > { %s2406_s20 = smul.u32 (%p2843_p4), 312, %s164_s16 }
  0x41   : > { %s171_s25 = ssub.s32 (%p2843_p4), 25, %s169_s18 }
  0x42   : > { %p172_p9 = scmp.lt.s32.totalorder (%p2843_p4), %s171_s25, 13  ;;  %s168_s29 = scalar_lea.vmem (%p2843_p4), [#allocation6], %s2406_s20 }
  0x45   : > { %s4033_s25 = smov (!%p172_p9, %s171_s25), 13 }
  0x46   : > { %s2915_s26 = smul.u32 384, %s4033_s25 }
  0x48   : > { %s177_s27 = ssub.s32 4992, %s2915_s26 }
  0x49   : > { %178 = vsyncadd %s2918_s28, %s177_s27  ;;  %p2397_p4 = scmp.ne.s32.totalorder %s2915_s26, 0  ;;  %s2418_s19 = smul.u32 4992, %s2771_s13 }
  0x4a   : > { %s185_s3 = sshll.u32 %s168_s29, 4  ;;  %s2665_s8 = scalar_lea.hbm %s3934_s1, 9600  ;;  %s2928_s3 = int_to_ptr.vmem [resolvable:$true] %s185_s3 }
  0x4b   : > { %s2926_s30 = scalar_lea.hbm %s3934_s1, %s2418_s19 }
  0x4c   : > { %s2661_s4 = scalar_lea.hbm %s2926_s30, %s2915_s26  ;;  %p2666_p3 = scmp.lt.u32.totalorder %s2926_s30, %s3934_s1 }
  0x4d   : > { %p2662_p11 = scmp.ne.s32.totalorder %s2926_s30, %s2661_s4  ;;  %p2667_p10 = scmp.lt.u32.totalorder %s2665_s8, %s2661_s4 }
  0x4e   : > { %p2669_p1 = scmp.lt.u32.totalorder %s2661_s4, %s2926_s30 }
  0x4f   : > { %p2663_p12 = pnand %p2662_p11, %p2397_p4  ;;  %p2668_p13 = por %p2667_p10, %p2666_p3 }
  0x51   : > { %p2664_p0 = pneg %p2663_p12  ;;  %p2670_p2 = por %p2669_p1, %p2668_p13 }
  0x53   : > { %p2671_p5 = pnand %p2670_p2, %p2664_p0 }
  0x55   : > { %2674 = shalt.err (!%p2671_p5)
}
  0x56   : > { %s2675_s20 = scalar_lea.vmem %s2928_s3, %s2915_s26  ;;  %s2780_s25 = smov [#allocation6]  }
  0x57   : > { %p2676_p6 = scmp.ne.s32.totalorder %s2928_s3, %s2675_s20  ;;  %s2679_s27 = sshll.u32 %s2780_s25, 4  ;;  %s2680_s27 = int_to_ptr.vmem [resolvable:$false] %s2679_s27 }
  0x58   : > { %s2681_s29 = scalar_lea.vmem %s2680_s27, 9984  ;;  %p2682_p11 = scmp.lt.s32.totalorder %s2928_s3, %s2680_s27 }
  0x59   : > { %p2677_p7 = pnand %p2676_p6, %p2397_p4  ;;  %p2683_p12 = scmp.lt.s32.totalorder %s2681_s29, %s2675_s20 }
  0x5b   : > { %p2678_p9 = pneg %p2677_p7  ;;  %p2684_p3 = por %p2683_p12, %p2682_p11 }
  0x5d   : > { %p2685_p10 = pnand %p2684_p3, %p2678_p9 }
  0x5f   : > { %2688 = shalt.err (!%p2685_p10)
}
  0x60   : > { %s2781_s19 = smov 384   ;;  %s2782_s6 = smov 24  }
  0x61   : > { %191 = dma.hbm_to_vmem [thread:$0]  (%p2397_p4), %s2926_s30, %s2915_s26, %s2928_s3, %s2918_s28, %s2781_s19, %s2781_s19, %s2782_s6  }
  0x62 PF: > { %p2400_p0 = scmp.ge.s32.totalorder %s2775_s14, 1  ;;  %p193_p13 = scmp.lt.s32.totalorder %s2775_s14, 3 }
  0x64   : > { %p194_p1 = pnand %p2400_p0, %p193_p13 }
  0x65   : > { %s2958_s15 = sand.u32 (!%p194_p1), 1, %s2759_s10  }
  0x66   : > { %197 = sbr.rel (%p194_p1) target bundleno = 618 (0x26a), region = 28  ;;  %s200_s5 = scalar_lea.sflag (!%p194_p1), [#allocation4], %s2958_s15 }
  0x67   : > { %s2408_s4 = smul.u32 (!%p194_p1), 312, %s2958_s15 }
  0x69   : > { %s2962_s7 = scalar_lea.vmem (!%p194_p1), [#allocation3], %s2408_s4 }
  0x6d   : > { %2742 = dma.done.wait (%p2849_p8), %s200_s5, 4992  }
  0x6e   : > { %2744 = vsyncadd (%p2849_p8), %s200_s5, 4294962304  ;;  %s209_s26 = scalar_lea.sflag [#allocation7], %s2958_s15  ;;  %s2969_s28 = scalar_lea.vmem [#allocation6], %s2408_s4 }
  0x6f   : > { %2746 = dma.done.wait (%p2849_p8), %s209_s26, 4992  }
  0x70   : > { %2748 = vsyncadd (%p2849_p8), %s209_s26, 4294962304  ;;  %v257_v0 = vld [vmem:[%s2962_s7] sm:$0xff]  ;;  %v258_v1 = vld [vmem:[%s2962_s7 + $0x8] sm:$0xff]  ;;  %s2401_s21 = sshll.u32 %s2767_s12, 4  ;;  %s236_s3 = scalar_lea.vmem [#allocation8], %s2958_s15 }
  0x71   : > { %v259_v2 = vld [vmem:[%s2962_s7 + $0x10] sm:$0xff]  ;;  %v452_v3 = vand.u32 2147483647, %v257_v0  ;;  %v453_v4 = vand.u32 2147483647, %v258_v1  ;;  %v264_v10 = vld [vmem:[%s2962_s7 + $0x38] sm:$0xff]  ;;  %s3883_s18 = scalar_lea.hbm %s3935_s2, %s2401_s21 }
  0x72   : > { %v454_v5 = vand.u32 2147483647, %v259_v2  ;;  %v263_v7 = vld [vmem:[%s2962_s7 + $0x30] sm:$0xff]  ;;  %v265_v13 = vld [vmem:[%s2962_s7 + $0x40] sm:$0xff]  ;;  %v297_v17 = vld [vmem:[%s2969_s28 + $0x8] sm:$0xff]  ;;  %v335_v18 = vmax.f32 %v257_v0, 0.0 }
  0x73   : > { %v491_v6 = vsub.f32 0.0, %v452_v3  ;;  %v492_v8 = vsub.f32 0.0, %v453_v4  ;;  %v296_v11 = vld [vmem:[%s2969_s28] sm:$0xff]  ;;  %v458_v16 = vand.u32 2147483647, %v263_v7  ;;  %v298_v20 = vld [vmem:[%s2969_s28 + $0x10] sm:$0xff]  ;;  %v375_v30 = vmul.f32 %v297_v17, %v258_v1 }
  0x74   : > { %v493_v9 = vsub.f32 0.0, %v454_v5  ;;  %v459_v19 = vand.u32 2147483647, %v264_v10  ;;  %v336_v21 = vmax.f32 %v258_v1, 0.0  ;;  %v460_v22 = vand.u32 2147483647, %v265_v13 }
  0x75   : > { %v530_v12 = vmul.f32 1.442695, %v491_v6  ;;  %v532_v14 = vmul.f32 1.442695, %v492_v8  ;;  %v497_v23 = vsub.f32 0.0, %v458_v16  ;;  %v2985_v24 = vld [vmem:[%s2962_s7 + $0x18] sm:$0xff]  ;;  %v374_v26 = vmul.f32 %v296_v11, %v257_v0 }
  0x76   : > { %v534_v15 = vmul.f32 1.442695, %v493_v9  ;;  %v337_v25 = vmax.f32 %v259_v2, 0.0  ;;  %v302_v27 = vld [vmem:[%s2969_s28 + $0x30] sm:$0xff]  ;;  %v498_v28 = vsub.f32 0.0, %v459_v19  ;;  %v303_v31 = vld [vmem:[%s2969_s28 + $0x38] sm:$0xff]  ;;  %v376_v36 = vmul.f32 %v298_v20, %v259_v2 }
  0x77   : > { %2477 = vpow2.f32 %v530_v12  ;;  %v2989_v29 = vld [vmem:[%s2962_s7 + $0x20] sm:$0xff]  ;;  %v304_v32 = vld [vmem:[%s2969_s28 + $0x40] sm:$0xff]  ;;  %v341_v33 = vmax.f32 %v263_v7, 0.0  ;;  %v499_v34 = vsub.f32 0.0, %v460_v22  ;;  %v542_v35 = vmul.f32 1.442695, %v497_v23 }
  0x78   : > { %2479 = vpow2.f32 %v532_v14  ;;  %v342_v37 = vmax.f32 %v264_v10, 0.0  ;;  %v544_v38 = vmul.f32 1.442695, %v498_v28  ;;  %v2994_v39 = vld [vmem:[%s2962_s7 + $0x28] sm:$0xff]  ;;  %v455_v40 = vand.u32 2147483647, %v2985_v24 }
  0x79   : > { %2481 = vpow2.f32 %v534_v15  ;;  %v343_v41 = vmax.f32 %v265_v13, 0.0  ;;  %v546_v42 = vmul.f32 1.442695, %v499_v34  ;;  %v456_v43 = vand.u32 2147483647, %v2989_v29  ;;  %v299_v0 = vld [vmem:[%s2969_s28 + $0x18] sm:$0xff] }
  0x7a   : > { %2483 = vpow2.f32 %v542_v35  ;;  %v380_v44 = vmul.f32 %v302_v27, %v263_v7  ;;  %v381_v45 = vmul.f32 %v303_v31, %v264_v10  ;;  %v382_v46 = vmul.f32 %v304_v32, %v265_v13  ;;  %v3015_v3 = vld [vmem:[%s2962_s7 + $0x48] sm:$0xff]  ;;  %v3018_v7 = vld [vmem:[%s2962_s7 + $0x50] sm:$0xff]  ;;  %s2283_s30 = sshll.u32 %s236_s3, 4  ;;  %s2271_s20 = scalar_lea.sflag [#allocation5], %s2958_s15  ;;  %s3885_s30 = int_to_ptr.vmem [resolvable:$true] %s2283_s30 }
  0x7b   : > { %2485 = vpow2.f32 %v544_v38  ;;  %v457_v47 = vand.u32 2147483647, %v2994_v39  ;;  %v494_v48 = vsub.f32 0.0, %v455_v40  ;;  %v495_v49 = vsub.f32 0.0, %v456_v43  ;;  %s2689_s25 = scalar_lea.vmem %s3885_s30, 16  ;;  %p4020_p4 = scmp.ne.s32.totalorder %s3940_s22, 0 }
  0x7c   : > { %2487 = vpow2.f32 %v546_v42  ;;  %v2999_v50 = vsub.f32 %v335_v18, %v374_v26  ;;  %v3001_v54 = vsub.f32 %v336_v21, %v375_v30  ;;  %v3003_v55 = vsub.f32 %v337_v25, %v376_v36  ;;  %v300_v26 = vld [vmem:[%s2969_s28 + $0x20] sm:$0xff]  ;;  %p2690_p8 = scmp.ne.s32.totalorder %s3885_s30, %s2689_s25  ;;  %s2786_s12 = smov [#allocation8]  }
  0x7d   : > { %v536_v51 = vmul.f32 1.442695, %v494_v48  ;;  %v538_v52 = vmul.f32 1.442695, %v495_v49  ;;  %v3005_v56 = vsub.f32 %v341_v33, %v380_v44  ;;  %v3007_v57 = vsub.f32 %v342_v37, %v381_v45  ;;  %s2693_s27 = sshll.u32 %s2786_s12, 4  ;;  %s2694_s27 = int_to_ptr.vmem [resolvable:$false] %s2693_s27 }
  0x7e   : > { %v3009_v60 = vsub.f32 %v343_v41, %v382_v46  ;;  %v496_v61 = vsub.f32 0.0, %v457_v47  ;;  %v338_v1 = vmax.f32 %v2985_v24, 0.0  ;;  %v339_v2 = vmax.f32 %v2989_v29, 0.0  ;;  %v3048_v47 = vld [vmem:[%s2962_s7 + $0x58] sm:$0xff]  ;;  %p2691_p2 = pnand %p2690_p8, %p4020_p4  ;;  %s2695_s29 = scalar_lea.vmem %s2694_s27, 32 }
  0x7f   : > { %2489 = vpow2.f32 %v536_v51  ;;  %v340_v10 = vmax.f32 %v2994_v39, 0.0  ;;  %v3022_v12 = vmul.f32 %v299_v0, %v2985_v24  ;;  %v461_v14 = vand.u32 2147483647, %v3015_v3  ;;  %p2696_p6 = scmp.lt.s32.totalorder %s3885_s30, %s2694_s27  ;;  %p2697_p7 = scmp.lt.s32.totalorder %s2695_s29, %s2689_s25 }
  0x80   : > { %2491 = vpow2.f32 %v538_v52  ;;  %v540_v13 = vmul.f32 1.442695, %v496_v61  ;;  %v462_v19 = vand.u32 2147483647, %v3018_v7  ;;  %v3036_v37 = vmul.f32 %v300_v26, %v2989_v29  ;;  %p2692_p5 = pneg %p2691_p2 }
  0x81   : > { %v2478_v53 = vpop.eup %2477  ;;  %p2698_p9 = por %p2697_p7, %p2696_p6 }
  0x82   : > { %v2480_v58 = vpop.eup %2479  ;;  %v608_v59 = vadd.f32 1.0, %v2478_v53  ;;  %v611_v4 = vmul.f32 -0.5, %v2478_v53  ;;  %v614_v8 = vand.u32 2147483647, %v2478_v53 }
  0x83   : > { %v2482_v62 = vpop.eup %2481  ;;  %v617_v63 = vadd.f32 1.0, %v2480_v58  ;;  %v620_v5 = vmul.f32 -0.5, %v2480_v58  ;;  %v623_v16 = vand.u32 2147483647, %v2480_v58  ;;  %p2699_p11 = pnand %p2698_p9, %p2692_p5 }
  0x84   : > { %2493 = vlog2.f32 %v608_v59  ;;  %v626_v6 = vadd.f32 1.0, %v2482_v62  ;;  %v629_v9 = vmul.f32 -0.5, %v2482_v62  ;;  %v2484_v11 = vpop.eup %2483  ;;  %v612_v21 = vadd.f32 1.0, %v611_v4 }
  0x85   : > { %2495 = vlog2.f32 %v617_v63  ;;  %v2486_v15 = vpop.eup %2485  ;;  %v662_v17 = vadd.f32 1.0, %v2484_v11  ;;  %v665_v18 = vmul.f32 -0.5, %v2484_v11  ;;  %v621_v22 = vadd.f32 1.0, %v620_v5 }
  0x86   : > { %2497 = vlog2.f32 %v626_v6  ;;  %v2488_v20 = vpop.eup %2487  ;;  %v671_v23 = vadd.f32 1.0, %v2486_v15  ;;  %v674_v25 = vmul.f32 -0.5, %v2486_v15  ;;  %vm3027_vm0 = vcmp.lt.f32.partialorder %v614_v8, 0.0004427343 }
  0x87   : > { %v630_v28 = vadd.f32 1.0, %v629_v9  ;;  %v632_v30 = vand.u32 2147483647, %v2482_v62  ;;  %2499 = vlog2.f32 %v662_v17  ;;  %v666_v31 = vadd.f32 1.0, %v665_v18 }
  0x88   : > { %v668_v32 = vand.u32 2147483647, %v2484_v11  ;;  %2501 = vlog2.f32 %v671_v23  ;;  %v680_v33 = vadd.f32 1.0, %v2488_v20  ;;  %vm3031_vm1 = vcmp.lt.f32.partialorder %v623_v16, 0.0004427343 }
  0x89   : > { %v677_v35 = vand.u32 2147483647, %v2486_v15  ;;  %v683_v36 = vmul.f32 -0.5, %v2488_v20  ;;  %v3038_v38 = vpop.eup %2489  ;;  %v613_v40 = vmul.f32 %v2478_v53, %v612_v21  ;;  %v622_v41 = vmul.f32 %v2480_v58, %v621_v22 }
  0x8a   : > { %v675_v42 = vadd.f32 1.0, %v674_v25  ;;  %2503 = vlog2.f32 %v680_v33  ;;  %v3040_v43 = vpop.eup %2491  ;;  %vm3042_vm2 = vcmp.lt.f32.partialorder %v632_v30, 0.0004427343  ;;  %v686_v45 = vand.u32 2147483647, %v2488_v20 }
  0x8b   : > { %2505 = vpow2.f32 %v540_v13  ;;  %v635_v46 = vadd.f32 1.0, %v3038_v38  ;;  %v631_v49 = vmul.f32 %v2482_v62, %v630_v28  ;;  %v667_v51 = vmul.f32 %v2484_v11, %v666_v31 }
  0x8c   : > { %vm3050_vm3 = vcmp.lt.f32.partialorder %v668_v32, 0.0004427343  ;;  %v644_v53 = vadd.f32 1.0, %v3040_v43  ;;  %vm3055_vm4 = vcmp.lt.f32.partialorder %v677_v35, 0.0004427343  ;;  %v684_v63 = vadd.f32 1.0, %v683_v36 }
  0x8d   : > { %2507 = vlog2.f32 %v635_v46  ;;  %v676_v5 = vmul.f32 %v2486_v15, %v675_v42  ;;  %v463_v62 = vand.u32 2147483647, %v3048_v47  ;;  %vm3062_vm5 = vcmp.lt.f32.partialorder %v686_v45, 0.0004427343  ;;  %v301_v36 = vld [vmem:[%s2969_s28 + $0x28] sm:$0xff] }
  0x8e   : > { %v2494_v48 = vpop.eup %2493  ;;  %2509 = vlog2.f32 %v644_v53  ;;  %v638_v11 = vmul.f32 -0.5, %v3038_v38  ;;  %v647_v15 = vmul.f32 -0.5, %v3040_v43  ;;  %v500_v17 = vsub.f32 0.0, %v461_v14 }
  0x8f   : > { %v2496_v58 = vpop.eup %2495  ;;  %v610_v59 = vmul.f32 0.6931472, %v2494_v48  ;;  %v685_v23 = vmul.f32 %v2488_v20, %v684_v63  ;;  %v501_v25 = vsub.f32 0.0, %v462_v19  ;;  %v502_v30 = vsub.f32 0.0, %v463_v62  ;;  %v3106_v62 = vld [vmem:[%s2962_s7 + $0x68] sm:$0xff] }
  0x90   : > { %v2498_v0 = vpop.eup %2497  ;;  %v619_v4 = vmul.f32 0.6931472, %v2496_v58  ;;  %v548_v31 = vmul.f32 1.442695, %v500_v17  ;;  %v639_v33 = vadd.f32 1.0, %v638_v11  ;;  %v379_v52 = vmul.f32 %v301_v36, %v2994_v39 }
  0x91   : > { %v616_v6 = vsel %vm3027_vm0, %v613_v40, %v610_v59  ;;  %v628_v8 = vmul.f32 0.6931472, %v2498_v0  ;;  %v2500_v18 = vpop.eup %2499  ;;  %v550_v34 = vmul.f32 1.442695, %v501_v25  ;;  %v648_v40 = vadd.f32 1.0, %v647_v15 }
  0x92   : > { %v625_v13 = vsel %vm3031_vm1, %v622_v41, %v619_v4  ;;  %v959_v16 = vadd.f32 %v616_v6, %v2999_v50  ;;  %v2502_v26 = vpop.eup %2501  ;;  %v664_v28 = vmul.f32 0.6931472, %v2500_v18  ;;  %2511 = vpow2.f32 %v548_v31  ;;  %v3095_v4 = vld [vmem:[%s2962_s7 + $0x60] sm:$0xff]  ;;  %v3109_v6 = vld [vmem:[%s2962_s7 + $0x70] sm:$0xff] }
  0x93   : > { %v634_v21 = vsel %vm3042_vm2, %v631_v49, %v628_v8  ;;  %v960_v22 = vadd.f32 %v625_v13, %v3001_v54  ;;  %v673_v50 = vmul.f32 0.6931472, %v2502_v26  ;;  %v552_v54 = vmul.f32 1.442695, %v502_v30  ;;  %v305_v13 = vld [vmem:[%s2969_s28 + $0x48] sm:$0xff] }
  0x94   : > { %v961_v27 = vadd.f32 %v634_v21, %v3003_v55  ;;  %v2504_v14 = vpop.eup %2503  ;;  %v670_v35 = vsel %vm3050_vm3, %v667_v51, %v664_v28  ;;  %v641_v45 = vand.u32 2147483647, %v3038_v38  ;;  %v650_v46 = vand.u32 2147483647, %v3040_v43 }
  0x95   : > { %v999_v32 = vadd.f32 %v960_v22, %v959_v16  ;;  %v3078_v20 = vpop.eup %2505  ;;  %v679_v55 = vsel %vm3055_vm4, %v676_v5, %v673_v50  ;;  %v682_v41 = vmul.f32 0.6931472, %v2504_v14  ;;  %v965_v42 = vadd.f32 %v670_v35, %v3005_v56  ;;  %v306_v16 = vld [vmem:[%s2969_s28 + $0x50] sm:$0xff] }
  0x96   : > { %v966_v44 = vadd.f32 %v679_v55, %v3007_v57  ;;  %v653_v48 = vadd.f32 1.0, %v3078_v20  ;;  %v640_v53 = vmul.f32 %v3038_v38, %v639_v33  ;;  %2513 = vpow2.f32 %v550_v34 }
  0x97   : > { %v1000_v19 = vadd.f32 %v999_v32, %v961_v27  ;;  %v2508_v49 = vpop.eup %2507  ;;  %v688_v51 = vsel %vm3062_vm5, %v685_v23, %v682_v41  ;;  %v656_v59 = vmul.f32 -0.5, %v3078_v20  ;;  %v649_v0 = vmul.f32 %v3040_v43, %v648_v40  ;;  %v308_v41 = vld [vmem:[%s2969_s28 + $0x60] sm:$0xff] }
  0x98   : > { %v2510_v56 = vpop.eup %2509  ;;  %v967_v57 = vadd.f32 %v688_v51, %v3009_v60  ;;  %v1007_v58 = vadd.f32 %v966_v44, %v965_v42  ;;  %2515 = vlog2.f32 %v653_v48  ;;  %v637_v61 = vmul.f32 0.6931472, %v2508_v49  ;;  %v309_v51 = vld [vmem:[%s2969_s28 + $0x68] sm:$0xff] }
  0x99   : > { %1001 = vadd.xlane.f32.xlu0 %v1000_v19  ;;  %v646_v63 = vmul.f32 0.6931472, %v2510_v56  ;;  %2517 = vpow2.f32 %v552_v54  ;;  %vm3097_vm6 = vcmp.lt.f32.partialorder %v641_v45, 0.0004427343  ;;  %vm3101_vm7 = vcmp.lt.f32.partialorder %v650_v46, 0.0004427343 }
  0x9a   : > { %v1008_v5 = vadd.f32 %v1007_v58, %v967_v57  ;;  %v416_v43 = vsub.f32 %v338_v1, %v3022_v12  ;;  %v417_v8 = vsub.f32 %v339_v2, %v3036_v37  ;;  %v418_v9 = vsub.f32 %v340_v10, %v379_v52  ;;  %v307_v10 = vld [vmem:[%s2969_s28 + $0x58] sm:$0xff]  ;;  %v310_v52 = vld [vmem:[%s2969_s28 + $0x70] sm:$0xff] }
  0x9b   : > { %v657_v11 = vadd.f32 1.0, %v656_v59  ;;  %v344_v15 = vmax.f32 %v3015_v3, 0.0  ;;  %v464_v17 = vand.u32 2147483647, %v3095_v4  ;;  %v643_v24 = vsel %vm3097_vm6, %v640_v53, %v637_v61  ;;  %v3157_v53 = vld [vmem:[%s2962_s7 + $0x90] sm:$0xff]  ;;  %v3164_v61 = vld [vmem:[%s2962_s7 + $0x98] sm:$0xff] }
  0x9c   : > { %1009 = vadd.xlane.f32.xlu1 %v1008_v5  ;;  %v652_v1 = vsel %vm3101_vm7, %v649_v0, %v646_v63  ;;  %v465_v29 = vand.u32 2147483647, %v3106_v62  ;;  %v466_v2 = vand.u32 2147483647, %v3109_v6  ;;  %v3129_v12 = vpop.eup %2511  ;;  %v659_v39 = vand.u32 2147483647, %v3078_v20 }
  0x9d   : > { %v345_v37 = vmax.f32 %v3018_v7, 0.0  ;;  %v346_v18 = vmax.f32 %v3048_v47, 0.0  ;;  %v503_v21 = vsub.f32 0.0, %v464_v17  ;;  %v383_v22 = vmul.f32 %v305_v13, %v3015_v3  ;;  %v3167_v63 = vld [vmem:[%s2962_s7 + $0xa0] sm:$0xff] }
  0x9e   : > { %v384_v23 = vmul.f32 %v306_v16, %v3018_v7  ;;  %v689_v25 = vadd.f32 1.0, %v3129_v12  ;;  %v504_v26 = vsub.f32 0.0, %v465_v29  ;;  %v962_v27 = vadd.f32 %v643_v24, %v416_v43 }
  0x9f   : > { %v963_v28 = vadd.f32 %v652_v1, %v417_v8  ;;  %v505_v30 = vsub.f32 0.0, %v466_v2  ;;  %v554_v31 = vmul.f32 1.442695, %v503_v21  ;;  %v658_v50 = vmul.f32 %v3078_v20, %v657_v11  ;;  %v3194_v21 = vld [vmem:[%s2962_s7 + $0x78] sm:$0xff] }
  0xa0   : > { %v2514_v32 = vpop.eup %2513  ;;  %v385_v33 = vmul.f32 %v307_v10, %v3048_v47  ;;  %2519 = vlog2.f32 %v689_v25  ;;  %v556_v34 = vmul.f32 1.442695, %v504_v26  ;;  %vm3140_vm8 = vcmp.lt.f32.partialorder %v659_v39, 0.0004427343 }
  0xa1   : > { %v692_v7 = vmul.f32 -0.5, %v3129_v12  ;;  %v698_v35 = vadd.f32 1.0, %v2514_v32  ;;  %2521 = vpow2.f32 %v554_v31  ;;  %v3145_v54 = vsub.f32 %v344_v15, %v383_v22 }
  0xa2   : > { %v2516_v14 = vpop.eup %2515  ;;  %2523 = vpow2.f32 %v556_v34  ;;  %v558_v47 = vmul.f32 1.442695, %v505_v30  ;;  %v1003_v20 = vadd.f32 %v963_v28, %v962_v27  ;;  %v701_v19 = vmul.f32 -0.5, %v2514_v32  ;;  %v3203_v28 = vld [vmem:[%s2962_s7 + $0x80] sm:$0xff] }
  0xa3   : > { %v2518_v36 = vpop.eup %2517  ;;  %v655_v40 = vmul.f32 0.6931472, %v2516_v14  ;;  %2525 = vlog2.f32 %v698_v35  ;;  %v3150_v44 = vsub.f32 %v345_v37, %v384_v23  ;;  %v3152_v48 = vsub.f32 %v346_v18, %v385_v33 }
  0xa4   : > { %v707_v55 = vadd.f32 1.0, %v2518_v36  ;;  %v710_v45 = vmul.f32 -0.5, %v2518_v36  ;;  %2527 = vpow2.f32 %v558_v47  ;;  %v693_v49 = vadd.f32 1.0, %v692_v7  ;;  %v314_v7 = vld [vmem:[%s2969_s28 + $0x90] sm:$0xff] }
  0xa5   : > { %v661_v42 = vsel %vm3140_vm8, %v658_v50, %v655_v40  ;;  %v695_v56 = vand.u32 2147483647, %v3129_v12  ;;  %v347_v57 = vmax.f32 %v3095_v4, 0.0  ;;  %v348_v58 = vmax.f32 %v3106_v62, 0.0 }
  0xa6   : > { %v964_v46 = vadd.f32 %v661_v42, %v418_v9  ;;  %2529 = vlog2.f32 %v707_v55  ;;  %v386_v59 = vmul.f32 %v308_v41, %v3095_v4  ;;  %v702_v5 = vadd.f32 1.0, %v701_v19 }
  0xa7   : > { %v704_v38 = vand.u32 2147483647, %v2514_v32  ;;  %v349_v60 = vmax.f32 %v3109_v6, 0.0  ;;  %v711_v43 = vadd.f32 1.0, %v710_v45  ;;  %v713_v8 = vand.u32 2147483647, %v2518_v36 }
  0xa8   : > { %v1004_v0 = vadd.f32 %v1003_v20, %v964_v46  ;;  %v3171_v9 = vmul.f32 %v309_v51, %v3106_v62  ;;  %v470_v11 = vand.u32 2147483647, %v3157_v53  ;;  %v694_v4 = vmul.f32 %v3129_v12, %v693_v49  ;;  %v3221_v51 = vld [vmem:[%s2962_s7 + $0x88] sm:$0xff] }
  0xa9   : > { %v3176_v13 = vmul.f32 %v310_v52, %v3109_v6  ;;  %v471_v16 = vand.u32 2147483647, %v3164_v61  ;;  %v472_v15 = vand.u32 2147483647, %v3167_v63  ;;  %vm3180_vm9 = vcmp.lt.f32.partialorder %v695_v56, 0.0004427343 }
  0xaa   : > { %1005 = vadd.xlane.f32.xlu0 %v1004_v0  ;;  %v2520_v17 = vpop.eup %2519  ;;  %v3184_v1 = vsub.f32 %v347_v57, %v386_v59  ;;  %v353_v29 = vmax.f32 %v3157_v53, 0.0  ;;  %v354_v2 = vmax.f32 %v3164_v61, 0.0  ;;  %v703_v10 = vmul.f32 %v2514_v32, %v702_v5  ;;  %v315_v57 = vld [vmem:[%s2969_s28 + $0x98] sm:$0xff] }
  0xab   : > { %v2522_v12 = vpop.eup %2521  ;;  %v691_v39 = vmul.f32 0.6931472, %v2520_v17  ;;  %vm3188_vm10 = vcmp.lt.f32.partialorder %v704_v38, 0.0004427343  ;;  %v355_v18 = vmax.f32 %v3167_v63, 0.0  ;;  %v712_v23 = vmul.f32 %v2518_v36, %v711_v43  ;;  %v311_v6 = vld [vmem:[%s2969_s28 + $0x78] sm:$0xff] }
  0xac   : > { %v3196_v22 = vpop.eup %2523  ;;  %vm3198_vm11 = vcmp.lt.f32.partialorder %v713_v8, 0.0004427343  ;;  %v716_v26 = vadd.f32 1.0, %v2522_v12  ;;  %v509_v27 = vsub.f32 0.0, %v470_v11  ;;  %v510_v50 = vsub.f32 0.0, %v471_v16 }
  0xad   : > { %v2526_v30 = vpop.eup %2525  ;;  %v697_v31 = vsel %vm3180_vm9, %v694_v4, %v691_v39  ;;  %v725_v32 = vadd.f32 1.0, %v3196_v22  ;;  %v511_v33 = vsub.f32 0.0, %v472_v15  ;;  %v719_v3 = vmul.f32 -0.5, %v2522_v12 }
  0xae   : > { %v3208_v34 = vpop.eup %2527  ;;  %v700_v14 = vmul.f32 0.6931472, %v2526_v30  ;;  %2531 = vlog2.f32 %v716_v26  ;;  %v467_v35 = vand.u32 2147483647, %v3194_v21  ;;  %v968_v40 = vadd.f32 %v697_v31, %v3145_v54 }
  0xaf   : > { %2533 = vlog2.f32 %v725_v32  ;;  %v728_v47 = vmul.f32 -0.5, %v3196_v22  ;;  %v468_v20 = vand.u32 2147483647, %v3203_v28  ;;  %v734_v41 = vadd.f32 1.0, %v3208_v34 }
  0xb0   : > { %v2530_v36 = vpop.eup %2529  ;;  %v706_v19 = vsel %vm3188_vm10, %v703_v10, %v700_v14  ;;  %v566_v42 = vmul.f32 1.442695, %v509_v27  ;;  %v722_v46 = vand.u32 2147483647, %v2522_v12  ;;  %v392_v49 = vmul.f32 %v314_v7, %v3157_v53  ;;  %v3254_v7 = vld [vmem:[%s2962_s7 + $0xc0] sm:$0xff] }
  0xb1   : > { %v709_v55 = vmul.f32 0.6931472, %v2530_v36  ;;  %v969_v45 = vadd.f32 %v706_v19, %v3150_v44  ;;  %v568_v54 = vmul.f32 1.442695, %v510_v50  ;;  %v720_v56 = vadd.f32 1.0, %v719_v3  ;;  %v316_v44 = vld [vmem:[%s2969_s28 + $0xa0] sm:$0xff] }
  0xb2   : > { %2535 = vlog2.f32 %v734_v41  ;;  %v570_v59 = vmul.f32 1.442695, %v511_v33  ;;  %v729_v38 = vadd.f32 1.0, %v728_v47  ;;  %v737_v43 = vmul.f32 -0.5, %v3208_v34  ;;  %v3281_v47 = vld [vmem:[%s2962_s7 + $0xd0] sm:$0xff] }
  0xb3   : > { %v715_v52 = vsel %vm3198_vm11, %v712_v23, %v709_v55  ;;  %v1011_v5 = vadd.f32 %v969_v45, %v968_v40  ;;  %2537 = vpow2.f32 %v566_v42  ;;  %v469_v8 = vand.u32 2147483647, %v3221_v51  ;;  %v313_v55 = vld [vmem:[%s2969_s28 + $0x88] sm:$0xff] }
  0xb4   : > { %v970_v0 = vadd.f32 %v715_v52, %v3152_v48  ;;  %v506_v11 = vsub.f32 0.0, %v467_v35  ;;  %v507_v4 = vsub.f32 0.0, %v468_v20  ;;  %v731_v15 = vand.u32 2147483647, %v3196_v22 }
  0xb5   : > { %v393_v17 = vmul.f32 %v315_v57, %v3164_v61  ;;  %2539 = vpow2.f32 %v568_v54  ;;  %v508_v24 = vsub.f32 0.0, %v469_v8  ;;  %v721_v10 = vmul.f32 %v2522_v12, %v720_v56  ;;  %v3277_v61 = vld [vmem:[%s2962_s7 + $0xc8] sm:$0xff] }
  0xb6   : > { %v1012_v16 = vadd.f32 %v1011_v5, %v970_v0  ;;  %2541 = vpow2.f32 %v570_v59  ;;  %v560_v39 = vmul.f32 1.442695, %v506_v11  ;;  %v562_v48 = vmul.f32 1.442695, %v507_v4 }
  0xb7   : > { %vm3232_vm12 = vcmp.lt.f32.partialorder %v722_v46, 0.0004427343  ;;  %v738_v23 = vadd.f32 1.0, %v737_v43  ;;  %v394_v25 = vmul.f32 %v316_v44, %v3167_v63  ;;  %v730_v27 = vmul.f32 %v3196_v22, %v729_v38 }
  0xb8   : > { %1013 = vadd.xlane.f32.xlu1 %v1012_v16  ;;  %v2532_v26 = vpop.eup %2531  ;;  %v740_v30 = vand.u32 2147483647, %v3208_v34  ;;  %2543 = vpow2.f32 %v560_v39  ;;  %v564_v31 = vmul.f32 1.442695, %v508_v24  ;;  %v426_v12 = vsub.f32 %v348_v58, %v3171_v9 }
  0xb9   : > { %v2534_v32 = vpop.eup %2533  ;;  %v718_v50 = vmul.f32 0.6931472, %v2532_v26  ;;  %vm3242_vm13 = vcmp.lt.f32.partialorder %v731_v15, 0.0004427343  ;;  %2545 = vpow2.f32 %v562_v48  ;;  %v427_v22 = vsub.f32 %v349_v60, %v3176_v13  ;;  %v312_v60 = vld [vmem:[%s2969_s28 + $0x80] sm:$0xff] }
  0xba   : > { %v727_v14 = vmul.f32 0.6931472, %v2534_v32  ;;  %v3251_v3 = vsub.f32 %v353_v29, %v392_v49  ;;  %v739_v58 = vmul.f32 %v3208_v34, %v738_v23  ;;  %v3261_v9 = vsub.f32 %v354_v2, %v393_v17 }
  0xbb   : > { %v724_v62 = vsel %vm3232_vm12, %v721_v10, %v718_v50  ;;  %2547 = vpow2.f32 %v564_v31  ;;  %vm3267_vm14 = vcmp.lt.f32.partialorder %v740_v30, 0.0004427343  ;;  %v3274_v34 = vsub.f32 %v355_v18, %v394_v25 }
  0xbc   : > { %v2536_v13 = vpop.eup %2535  ;;  %v733_v53 = vsel %vm3242_vm13, %v730_v27, %v727_v14  ;;  %v971_v35 = vadd.f32 %v724_v62, %v3184_v1  ;;  %v350_v40 = vmax.f32 %v3194_v21, 0.0  ;;  %v476_v20 = vand.u32 2147483647, %v3254_v7  ;;  %v3312_v62 = vld [vmem:[%s2962_s7 + $0xf0] sm:$0xff] }
  0xbd   : > { %v736_v2 = vmul.f32 0.6931472, %v2536_v13  ;;  %v972_v36 = vadd.f32 %v733_v53, %v426_v12  ;;  %v2538_v19 = vpop.eup %2537  ;;  %v351_v41 = vmax.f32 %v3203_v28, 0.0  ;;  %v352_v1 = vmax.f32 %v3221_v51, 0.0 }
  0xbe   : > { %v389_v63 = vmul.f32 %v311_v6, %v3194_v21  ;;  %v390_v18 = vmul.f32 %v312_v60, %v3203_v28  ;;  %v770_v49 = vadd.f32 1.0, %v2538_v19  ;;  %v477_v54 = vand.u32 2147483647, %v3277_v61 }
  0xbf   : > { %v2540_v42 = vpop.eup %2539  ;;  %v742_v45 = vsel %vm3267_vm14, %v739_v58, %v736_v2  ;;  %v1015_v46 = vadd.f32 %v972_v36, %v971_v35  ;;  %v773_v57 = vmul.f32 -0.5, %v2538_v19  ;;  %v478_v0 = vand.u32 2147483647, %v3281_v47  ;;  %v3324_v35 = vld [vmem:[%s2962_s7 + $0xf8] sm:$0xff] }
  0xc0   : > { %v2542_v52 = vpop.eup %2541  ;;  %v973_v56 = vadd.f32 %v742_v45, %v427_v22  ;;  %v779_v59 = vadd.f32 1.0, %v2540_v42  ;;  %2549 = vlog2.f32 %v770_v49  ;;  %v391_v21 = vmul.f32 %v313_v55, %v3221_v51 }
  0xc1   : > { %v788_v5 = vadd.f32 1.0, %v2542_v52  ;;  %v515_v38 = vsub.f32 0.0, %v476_v20  ;;  %v782_v44 = vmul.f32 -0.5, %v2540_v42  ;;  %v3294_v8 = vsub.f32 %v350_v40, %v389_v63  ;;  %v3328_v20 = vld [vmem:[%s2962_s7 + $0x100] sm:$0xff] }
  0xc2   : > { %v2544_v28 = vpop.eup %2543  ;;  %v1016_v43 = vadd.f32 %v1015_v46, %v973_v56  ;;  %2551 = vlog2.f32 %v779_v59  ;;  %v776_v4 = vand.u32 2147483647, %v2538_v19  ;;  %v791_v16 = vmul.f32 -0.5, %v2542_v52 }
  0xc3   : > { %v3296_v11 = vpop.eup %2545  ;;  %2553 = vlog2.f32 %v788_v5  ;;  %v516_v15 = vsub.f32 0.0, %v477_v54  ;;  %v774_v17 = vadd.f32 1.0, %v773_v57  ;;  %v3298_v24 = vsub.f32 %v351_v41, %v390_v18 }
  0xc4   : > { %1017 = vadd.xlane.f32.xlu0 %v1016_v43  ;;  %v743_v39 = vadd.f32 1.0, %v2544_v28  ;;  %v517_v48 = vsub.f32 0.0, %v478_v0  ;;  %v785_v10 = vand.u32 2147483647, %v2540_v42  ;;  %v746_v37 = vmul.f32 -0.5, %v2544_v28 }
  0xc5   : > { %v3300_v51 = vpop.eup %2547  ;;  %v752_v23 = vadd.f32 1.0, %v3296_v11  ;;  %v578_v25 = vmul.f32 1.442695, %v515_v38  ;;  %v783_v26 = vadd.f32 1.0, %v782_v44  ;;  %v794_v27 = vand.u32 2147483647, %v2542_v52 }
  0xc6   : > { %v3303_v30 = vsub.f32 %v352_v1, %v391_v21  ;;  %2555 = vlog2.f32 %v743_v39  ;;  %vm3305_vm15 = vcmp.lt.f32.partialorder %v776_v4, 0.0004427343  ;;  %v792_v32 = vadd.f32 1.0, %v791_v16  ;;  %v326_v39 = vld [vmem:[%s2969_s28 + $0xf0] sm:$0xff] }
  0xc7   : > { %2557 = vlog2.f32 %v752_v23  ;;  %v580_v12 = vmul.f32 1.442695, %v516_v15  ;;  %v775_v50 = vmul.f32 %v2538_v19, %v774_v17  ;;  %v749_v33 = vand.u32 2147483647, %v2544_v28 }
  0xc8   : > { %v755_v22 = vmul.f32 -0.5, %v3296_v11  ;;  %v761_v14 = vadd.f32 1.0, %v3300_v51  ;;  %vm3314_vm0 = vcmp.lt.f32.partialorder %v785_v10, 0.0004427343  ;;  %v747_v6 = vadd.f32 1.0, %v746_v37  ;;  %v320_v37 = vld [vmem:[%s2969_s28 + $0xc0] sm:$0xff] }
  0xc9   : > { %2559 = vpow2.f32 %v578_v25  ;;  %v582_v60 = vmul.f32 1.442695, %v517_v48  ;;  %v784_v13 = vmul.f32 %v2540_v42, %v783_v26  ;;  %vm3318_vm1 = vcmp.lt.f32.partialorder %v794_v27, 0.0004427343 }
  0xca   : > { %v758_v29 = vand.u32 2147483647, %v3296_v11  ;;  %2561 = vlog2.f32 %v761_v14  ;;  %v2550_v2 = vpop.eup %2549  ;;  %v793_v36 = vmul.f32 %v2542_v52, %v792_v32  ;;  %v764_v40 = vmul.f32 -0.5, %v3300_v51 }
  0xcb   : > { %2563 = vpow2.f32 %v580_v12  ;;  %v482_v19 = vand.u32 2147483647, %v3312_v62  ;;  %v772_v41 = vmul.f32 0.6931472, %v2550_v2  ;;  %vm3331_vm2 = vcmp.lt.f32.partialorder %v749_v33, 0.0004427343 }
  0xcc   : > { %v2552_v55 = vpop.eup %2551  ;;  %v756_v63 = vadd.f32 1.0, %v755_v22  ;;  %2565 = vpow2.f32 %v582_v60  ;;  %v748_v45 = vmul.f32 %v2544_v28, %v747_v6  ;;  %v767_v46 = vand.u32 2147483647, %v3300_v51  ;;  %v321_v12 = vld [vmem:[%s2969_s28 + $0xc8] sm:$0xff] }
  0xcd   : > { %v2554_v18 = vpop.eup %2553  ;;  %v781_v42 = vmul.f32 0.6931472, %v2552_v55  ;;  %v483_v49 = vand.u32 2147483647, %v3324_v35  ;;  %v778_v54 = vsel %vm3305_vm15, %v775_v50, %v772_v41  ;;  %v484_v56 = vand.u32 2147483647, %v3328_v20 }
  0xce   : > { %v790_v52 = vmul.f32 0.6931472, %v2554_v18  ;;  %v521_v57 = vsub.f32 0.0, %v482_v19  ;;  %v977_v0 = vadd.f32 %v778_v54, %v3251_v3  ;;  %v765_v5 = vadd.f32 1.0, %v764_v40  ;;  %v3386_v18 = vld [vmem:[%s2962_s7 + $0xb0] sm:$0xff] }
  0xcf   : > { %v787_v59 = vsel %vm3314_vm0, %v784_v13, %v781_v42  ;;  %v522_v21 = vsub.f32 0.0, %v483_v49  ;;  %v757_v44 = vmul.f32 %v3296_v11, %v756_v63  ;;  %vm3348_vm3 = vcmp.lt.f32.partialorder %v758_v29, 0.0004427343  ;;  %v3383_v63 = vld [vmem:[%s2962_s7 + $0xa8] sm:$0xff]  ;;  %v3389_v42 = vld [vmem:[%s2962_s7 + $0xb8] sm:$0xff] }
  0xd0   : > { %v2556_v38 = vpop.eup %2555  ;;  %v796_v28 = vsel %vm3318_vm1, %v793_v36, %v790_v52  ;;  %v978_v43 = vadd.f32 %v787_v59, %v3261_v9  ;;  %v590_v4 = vmul.f32 1.442695, %v521_v57  ;;  %v523_v23 = vsub.f32 0.0, %v484_v56 }
  0xd1   : > { %v2558_v16 = vpop.eup %2557  ;;  %v979_v15 = vadd.f32 %v796_v28, %v3274_v34  ;;  %v745_v17 = vmul.f32 0.6931472, %v2556_v38  ;;  %v592_v3 = vmul.f32 1.442695, %v522_v21  ;;  %v766_v25 = vmul.f32 %v3300_v51, %v765_v5  ;;  %v322_v51 = vld [vmem:[%s2969_s28 + $0xd0] sm:$0xff] }
  0xd2   : > { %v1023_v48 = vadd.f32 %v978_v43, %v977_v0  ;;  %v754_v10 = vmul.f32 0.6931472, %v2558_v16  ;;  %2567 = vpow2.f32 %v590_v4  ;;  %vm3356_vm4 = vcmp.lt.f32.partialorder %v767_v46, 0.0004427343 }
  0xd3   : > { %v2560_v9 = vpop.eup %2559  ;;  %v751_v11 = vsel %vm3331_vm2, %v748_v45, %v745_v17  ;;  %2569 = vpow2.f32 %v592_v3  ;;  %v359_v58 = vmax.f32 %v3254_v7, 0.0  ;;  %v398_v6 = vmul.f32 %v320_v37, %v3254_v7 }
  0xd4   : > { %v2562_v26 = vpop.eup %2561  ;;  %v1024_v27 = vadd.f32 %v1023_v48, %v979_v15  ;;  %v760_v31 = vsel %vm3348_vm3, %v757_v44, %v754_v10  ;;  %v974_v32 = vadd.f32 %v751_v11, %v3294_v8  ;;  %v824_v50 = vadd.f32 1.0, %v2560_v9 }
  0xd5   : > { %v3364_v33 = vpop.eup %2563  ;;  %v763_v22 = vmul.f32 0.6931472, %v2562_v26  ;;  %v975_v14 = vadd.f32 %v760_v31, %v3298_v24  ;;  %v827_v13 = vmul.f32 -0.5, %v2560_v9  ;;  %v594_v53 = vmul.f32 1.442695, %v523_v23 }
  0xd6   : > { %v3370_v60 = vpop.eup %2565  ;;  %1025 = vadd.xlane.f32.xlu0 %v1024_v27  ;;  %2571 = vlog2.f32 %v824_v50  ;;  %v833_v8 = vadd.f32 1.0, %v3364_v33  ;;  %v360_v2 = vmax.f32 %v3277_v61, 0.0  ;;  %v399_v36 = vmul.f32 %v321_v12, %v3277_v61 }
  0xd7   : > { %v769_v29 = vsel %vm3356_vm4, %v766_v25, %v763_v22  ;;  %v1019_v24 = vadd.f32 %v975_v14, %v974_v32  ;;  %v361_v40 = vmax.f32 %v3281_v47, 0.0  ;;  %v400_v19 = vmul.f32 %v322_v51, %v3281_v47 }
  0xd8   : > { %v976_v7 = vadd.f32 %v769_v29, %v3303_v30  ;;  %2573 = vlog2.f32 %v833_v8  ;;  %v437_v55 = vsub.f32 %v359_v58, %v398_v6  ;;  %v836_v41 = vmul.f32 -0.5, %v3364_v33  ;;  %v327_v6 = vld [vmem:[%s2969_s28 + $0xf8] sm:$0xff] }
  0xd9   : > { %v842_v1 = vadd.f32 1.0, %v3370_v60  ;;  %v828_v61 = vadd.f32 1.0, %v827_v13  ;;  %v830_v46 = vand.u32 2147483647, %v2560_v9  ;;  %2575 = vpow2.f32 %v594_v53  ;;  %v328_v13 = vld [vmem:[%s2969_s28 + $0x100] sm:$0xff] }
  0xda   : > { %v1020_v45 = vadd.f32 %v1019_v24, %v976_v7  ;;  %v438_v30 = vsub.f32 %v360_v2, %v399_v36  ;;  %v845_v47 = vmul.f32 -0.5, %v3370_v60  ;;  %v365_v49 = vmax.f32 %v3312_v62, 0.0 }
  0xdb   : > { %2577 = vlog2.f32 %v842_v1  ;;  %v3395_v52 = vsub.f32 %v361_v40, %v400_v19  ;;  %v473_v56 = vand.u32 2147483647, %v3383_v63  ;;  %v474_v57 = vand.u32 2147483647, %v3386_v18  ;;  %v3438_v19 = vld [vmem:[%s2962_s7 + $0x120] sm:$0xff] }
  0xdc   : > { %v3393_v54 = vpop.eup %2567  ;;  %1021 = vadd.xlane.f32.xlu1 %v1020_v45  ;;  %v475_v59 = vand.u32 2147483647, %v3389_v42  ;;  %v837_v5 = vadd.f32 1.0, %v836_v41  ;;  %v839_v21 = vand.u32 2147483647, %v3364_v33  ;;  %v366_v38 = vmax.f32 %v3324_v35, 0.0 }
  0xdd   : > { %v3400_v0 = vpop.eup %2569  ;;  %v878_v28 = vadd.f32 1.0, %v3393_v54  ;;  %v829_v43 = vmul.f32 %v2560_v9, %v828_v61  ;;  %vm3405_vm5 = vcmp.lt.f32.partialorder %v830_v46, 0.0004427343  ;;  %v512_v16 = vsub.f32 0.0, %v473_v56  ;;  %v3450_v61 = vld [vmem:[%s2962_s7 + $0x130] sm:$0xff]  ;;  %v3501_v45 = vld [vmem:[%s2962_s7 + $0xe8] sm:$0xff] }
  0xde   : > { %v887_v4 = vadd.f32 1.0, %v3400_v0  ;;  %v846_v15 = vadd.f32 1.0, %v845_v47  ;;  %v848_v17 = vand.u32 2147483647, %v3370_v60  ;;  %v513_v3 = vsub.f32 0.0, %v474_v57 }
  0xdf   : > { %2579 = vlog2.f32 %v878_v28  ;;  %v881_v10 = vmul.f32 -0.5, %v3393_v54  ;;  %v890_v37 = vmul.f32 -0.5, %v3400_v0  ;;  %v514_v23 = vsub.f32 0.0, %v475_v59 }
  0xe0   : > { %v2572_v48 = vpop.eup %2571  ;;  %2581 = vlog2.f32 %v887_v4  ;;  %v838_v11 = vmul.f32 %v3364_v33, %v837_v5  ;;  %v572_v25 = vmul.f32 1.442695, %v512_v16  ;;  %v574_v34 = vmul.f32 1.442695, %v513_v3 }
  0xe1   : > { %v826_v9 = vmul.f32 0.6931472, %v2572_v48  ;;  %vm3415_vm6 = vcmp.lt.f32.partialorder %v839_v21, 0.0004427343  ;;  %v367_v31 = vmax.f32 %v3328_v20, 0.0  ;;  %v404_v32 = vmul.f32 %v326_v39, %v3312_v62 }
  0xe2   : > { %v2574_v26 = vpop.eup %2573  ;;  %v576_v12 = vmul.f32 1.442695, %v514_v23  ;;  %v884_v14 = vand.u32 2147483647, %v3393_v54  ;;  %2583 = vpow2.f32 %v572_v25  ;;  %v847_v51 = vmul.f32 %v3370_v60, %v846_v15 }
  0xe3   : > { %v832_v50 = vsel %vm3405_vm5, %v829_v43, %v826_v9  ;;  %v835_v22 = vmul.f32 0.6931472, %v2574_v26  ;;  %v3424_v33 = vpop.eup %2575  ;;  %v882_v8 = vadd.f32 1.0, %v881_v10  ;;  %2585 = vpow2.f32 %v574_v34  ;;  %v317_v10 = vld [vmem:[%s2969_s28 + $0xa8] sm:$0xff] }
  0xe4   : > { %v983_v58 = vadd.f32 %v832_v50, %v437_v55  ;;  %vm3431_vm7 = vcmp.lt.f32.partialorder %v848_v17, 0.0004427343  ;;  %v891_v2 = vadd.f32 1.0, %v890_v37  ;;  %v896_v36 = vadd.f32 1.0, %v3424_v33  ;;  %v3441_v55 = vld [vmem:[%s2962_s7 + $0x128] sm:$0xff] }
  0xe5   : > { %v2578_v53 = vpop.eup %2577  ;;  %v841_v29 = vsel %vm3415_vm6, %v838_v11, %v835_v22  ;;  %v893_v40 = vand.u32 2147483647, %v3400_v0  ;;  %2587 = vpow2.f32 %v576_v12  ;;  %v405_v41 = vmul.f32 %v327_v6, %v3324_v35  ;;  %v319_v6 = vld [vmem:[%s2969_s28 + $0xb8] sm:$0xff]  ;;  %v333_v22 = vld [vmem:[%s2969_s28 + $0x128] sm:$0xff] }
  0xe6   : > { %v844_v7 = vmul.f32 0.6931472, %v2578_v53  ;;  %v984_v60 = vadd.f32 %v841_v29, %v438_v30  ;;  %v406_v1 = vmul.f32 %v328_v13, %v3328_v20  ;;  %vm3445_vm8 = vcmp.lt.f32.partialorder %v884_v14, 0.0004427343 }
  0xe7   : > { %2589 = vlog2.f32 %v896_v36  ;;  %v883_v47 = vmul.f32 %v3393_v54, %v882_v8  ;;  %v899_v56 = vmul.f32 -0.5, %v3424_v33  ;;  %v892_v20 = vmul.f32 %v3400_v0, %v891_v2  ;;  %v3490_v2 = vld [vmem:[%s2962_s7 + $0xd8] sm:$0xff] }
  0xe8   : > { %v850_v46 = vsel %vm3431_vm7, %v847_v51, %v844_v7  ;;  %v1031_v30 = vadd.f32 %v984_v60, %v983_v58  ;;  %v488_v5 = vand.u32 2147483647, %v3438_v19  ;;  %v489_v21 = vand.u32 2147483647, %v3441_v55 }
  0xe9   : > { %v2580_v57 = vpop.eup %2579  ;;  %v985_v59 = vadd.f32 %v850_v46, %v3395_v52  ;;  %v443_v43 = vsub.f32 %v365_v49, %v404_v32  ;;  %vm3462_vm9 = vcmp.lt.f32.partialorder %v893_v40, 0.0004427343  ;;  %v490_v54 = vand.u32 2147483647, %v3450_v61 }
  0xea   : > { %v2582_v28 = vpop.eup %2581  ;;  %v880_v44 = vmul.f32 0.6931472, %v2580_v57  ;;  %v444_v52 = vsub.f32 %v366_v38, %v405_v41  ;;  %v527_v15 = vsub.f32 0.0, %v488_v5  ;;  %v900_v39 = vadd.f32 1.0, %v899_v56 }
  0xeb   : > { %v1032_v16 = vadd.f32 %v1031_v30, %v985_v59  ;;  %v889_v0 = vmul.f32 0.6931472, %v2582_v28  ;;  %v528_v62 = vsub.f32 0.0, %v489_v21  ;;  %v902_v48 = vand.u32 2147483647, %v3424_v33 }
  0xec   : > { %v886_v17 = vsel %vm3445_vm8, %v883_v47, %v880_v44  ;;  %v2584_v3 = vpop.eup %2583  ;;  %v602_v37 = vmul.f32 1.442695, %v527_v15  ;;  %v445_v35 = vsub.f32 %v367_v31, %v406_v1  ;;  %v529_v9 = vsub.f32 0.0, %v490_v54  ;;  %v318_v31 = vld [vmem:[%s2969_s28 + $0xb0] sm:$0xff] }
  0xed   : > { %1033 = vadd.xlane.f32.xlu0 %v1032_v16  ;;  %v895_v49 = vsel %vm3462_vm9, %v892_v20, %v889_v0  ;;  %v2586_v23 = vpop.eup %2585  ;;  %v797_v38 = vadd.f32 1.0, %v2584_v3  ;;  %v989_v11 = vadd.f32 %v886_v17, %v443_v43  ;;  %v901_v27 = vmul.f32 %v3424_v33, %v900_v39 }
  0xee   : > { %v990_v25 = vadd.f32 %v895_v49, %v444_v52  ;;  %v806_v34 = vadd.f32 1.0, %v2586_v23  ;;  %2591 = vpow2.f32 %v602_v37  ;;  %v395_v32 = vmul.f32 %v317_v10, %v3383_v63 }
  0xef   : > { %v3475_v26 = vpop.eup %2587  ;;  %2593 = vlog2.f32 %v797_v38  ;;  %v604_v12 = vmul.f32 1.442695, %v528_v62  ;;  %vm3479_vm10 = vcmp.lt.f32.partialorder %v902_v48, 0.0004427343  ;;  %v800_v14 = vmul.f32 -0.5, %v2584_v3  ;;  %v324_v38 = vld [vmem:[%s2969_s28 + $0xe0] sm:$0xff] }
  0xf0   : > { %2595 = vlog2.f32 %v806_v34  ;;  %v815_v51 = vadd.f32 1.0, %v3475_v26  ;;  %v356_v33 = vmax.f32 %v3383_v63, 0.0  ;;  %v357_v13 = vmax.f32 %v3386_v18, 0.0  ;;  %v3497_v63 = vld [vmem:[%s2962_s7 + $0xe0] sm:$0xff] }
  0xf1   : > { %v2590_v50 = vpop.eup %2589  ;;  %v809_v8 = vmul.f32 -0.5, %v2586_v23  ;;  %v1039_v53 = vadd.f32 %v990_v25, %v989_v11  ;;  %v358_v29 = vmax.f32 %v3389_v42, 0.0  ;;  %v606_v24 = vmul.f32 1.442695, %v529_v9 }
  0xf2   : > { %v898_v58 = vmul.f32 0.6931472, %v2590_v50  ;;  %2597 = vlog2.f32 %v815_v51  ;;  %v396_v7 = vmul.f32 %v318_v31, %v3386_v18  ;;  %v818_v60 = vmul.f32 -0.5, %v3475_v26  ;;  %v332_v50 = vld [vmem:[%s2969_s28 + $0x120] sm:$0xff] }
  0xf3   : > { %2599 = vpow2.f32 %v604_v12  ;;  %v397_v41 = vmul.f32 %v319_v6, %v3389_v42  ;;  %v801_v1 = vadd.f32 1.0, %v800_v14  ;;  %v803_v46 = vand.u32 2147483647, %v2584_v3 }
  0xf4   : > { %v904_v36 = vsel %vm3479_vm10, %v901_v27, %v898_v58  ;;  %2601 = vpow2.f32 %v606_v24  ;;  %v810_v30 = vadd.f32 1.0, %v809_v8  ;;  %v479_v47 = vand.u32 2147483647, %v3490_v2  ;;  %v3543_v8 = vld [vmem:[%s2962_s7 + $0x108] sm:$0xff]  ;;  %v334_v24 = vld [vmem:[%s2969_s28 + $0x130] sm:$0xff] }
  0xf5   : > { %v991_v40 = vadd.f32 %v904_v36, %v445_v35  ;;  %v812_v57 = vand.u32 2147483647, %v2586_v23  ;;  %v480_v18 = vand.u32 2147483647, %v3497_v63  ;;  %v434_v59 = vsub.f32 %v356_v33, %v395_v32 }
  0xf6   : > { %v819_v20 = vadd.f32 1.0, %v818_v60  ;;  %v481_v5 = vand.u32 2147483647, %v3501_v45  ;;  %v518_v21 = vsub.f32 0.0, %v479_v47  ;;  %v435_v42 = vsub.f32 %v357_v13, %v396_v7  ;;  %v3547_v7 = vld [vmem:[%s2962_s7 + $0x110] sm:$0xff]  ;;  %v3550_v60 = vld [vmem:[%s2962_s7 + $0x118] sm:$0xff] }
  0xf7   : > { %v1040_v56 = vadd.f32 %v1039_v53, %v991_v40  ;;  %v436_v43 = vsub.f32 %v358_v29, %v397_v41  ;;  %v802_v44 = vmul.f32 %v2584_v3, %v801_v1  ;;  %v821_v4 = vand.u32 2147483647, %v3475_v26 }
  0xf8   : > { %v3506_v28 = vpop.eup %2591  ;;  %vm3509_vm11 = vcmp.lt.f32.partialorder %v803_v46, 0.0004427343  ;;  %v811_v52 = vmul.f32 %v2586_v23, %v810_v30  ;;  %v584_v15 = vmul.f32 1.442695, %v518_v21  ;;  %vm3514_vm12 = vcmp.lt.f32.partialorder %v812_v57, 0.0004427343 }
  0xf9   : > { %1041 = vadd.xlane.f32.xlu0 %v1040_v56  ;;  %v2594_v54 = vpop.eup %2593  ;;  %v932_v0 = vadd.f32 1.0, %v3506_v28  ;;  %v371_v49 = vmax.f32 %v3438_v19, 0.0  ;;  %v519_v3 = vsub.f32 0.0, %v480_v18  ;;  %v820_v10 = vmul.f32 %v3475_v26, %v819_v20 }
  0xfa   : > { %v2596_v17 = vpop.eup %2595  ;;  %v799_v39 = vmul.f32 0.6931472, %v2594_v54  ;;  %v520_v37 = vsub.f32 0.0, %v481_v5  ;;  %vm3522_vm13 = vcmp.lt.f32.partialorder %v821_v4, 0.0004427343  ;;  %v935_v9 = vmul.f32 -0.5, %v3506_v28 }
  0xfb   : > { %v808_v48 = vmul.f32 0.6931472, %v2596_v17  ;;  %2603 = vlog2.f32 %v932_v0  ;;  %v372_v27 = vmax.f32 %v3441_v55, 0.0  ;;  %v373_v31 = vmax.f32 %v3450_v61, 0.0 }
  0xfc   : > { %v2598_v23 = vpop.eup %2597  ;;  %v805_v35 = vsel %vm3509_vm11, %v802_v44, %v799_v39  ;;  %2605 = vpow2.f32 %v584_v15  ;;  %v586_v51 = vmul.f32 1.442695, %v519_v3  ;;  %v938_v6 = vand.u32 2147483647, %v3506_v28  ;;  %v323_v3 = vld [vmem:[%s2969_s28 + $0xd8] sm:$0xff] }
  0xfd   : > { %v3527_v11 = vpop.eup %2599  ;;  %v814_v25 = vsel %vm3514_vm12, %v811_v52, %v808_v48  ;;  %v817_v34 = vmul.f32 0.6931472, %v2598_v23  ;;  %v980_v26 = vadd.f32 %v805_v35, %v434_v59  ;;  %v588_v13 = vmul.f32 1.442695, %v520_v37 }
  0xfe   : > { %v3532_v32 = vpop.eup %2601  ;;  %v981_v12 = vadd.f32 %v814_v25, %v435_v42  ;;  %v941_v14 = vadd.f32 1.0, %v3527_v11  ;;  %v936_v36 = vadd.f32 1.0, %v935_v9  ;;  %v410_v40 = vmul.f32 %v332_v50, %v3438_v19  ;;  %v325_v9 = vld [vmem:[%s2969_s28 + $0xe8] sm:$0xff] }
  0xff   : > { %v823_v58 = vsel %vm3522_vm13, %v820_v10, %v817_v34  ;;  %v950_v33 = vadd.f32 1.0, %v3532_v32  ;;  %v411_v41 = vmul.f32 %v333_v22, %v3441_v55  ;;  %v944_v1 = vmul.f32 -0.5, %v3527_v11 }
 0x100   : > { %v982_v53 = vadd.f32 %v823_v58, %v436_v43  ;;  %v1027_v29 = vadd.f32 %v981_v12, %v980_v26  ;;  %2607 = vlog2.f32 %v941_v14  ;;  %v953_v30 = vmul.f32 -0.5, %v3532_v32 }
 0x101   : > { %2609 = vlog2.f32 %v950_v33  ;;  %v485_v47 = vand.u32 2147483647, %v3543_v8  ;;  %v412_v56 = vmul.f32 %v334_v24, %v3450_v61  ;;  %v486_v57 = vand.u32 2147483647, %v3547_v7 }
 0x102   : > { %v1028_v46 = vadd.f32 %v1027_v29, %v982_v53  ;;  %2611 = vpow2.f32 %v586_v51  ;;  %v487_v18 = vand.u32 2147483647, %v3550_v60  ;;  %v937_v59 = vmul.f32 %v3506_v28, %v936_v36 }
 0x103   : > { %2613 = vpow2.f32 %v588_v13  ;;  %vm3561_vm14 = vcmp.lt.f32.partialorder %v938_v6, 0.0004427343  ;;  %v524_v20 = vsub.f32 0.0, %v485_v47  ;;  %v945_v21 = vadd.f32 1.0, %v944_v1 }
 0x104   : > { %1029 = vadd.xlane.f32.xlu1 %v1028_v46  ;;  %v947_v42 = vand.u32 2147483647, %v3527_v11  ;;  %v525_v43 = vsub.f32 0.0, %v486_v57  ;;  %v526_v61 = vsub.f32 0.0, %v487_v18  ;;  %v2783_v44 = vmov 0  }
 0x105   : > { %v2604_v5 = vpop.eup %2603  ;;  %2475 = vset.pattern.permute.xlu1 %v2783_v44  ;;  %2476 = vset.pattern.permute.xlu0 %v2783_v44  ;;  %v954_v16 = vadd.f32 1.0, %v953_v30  ;;  %v596_v28 = vmul.f32 1.442695, %v524_v20  ;;  %v449_v52 = vsub.f32 %v371_v49, %v410_v40  ;;  %v956_v0 = vand.u32 2147483647, %v3532_v32  ;;  %v329_v40 = vld [vmem:[%s2969_s28 + $0x108] sm:$0xff] }
 0x106   : > { %v3566_v4 = vpop.eup %2605  ;;  %v934_v54 = vmul.f32 0.6931472, %v2604_v5  ;;  %v598_v17 = vmul.f32 1.442695, %v525_v43  ;;  %v450_v39 = vsub.f32 %v372_v27, %v411_v41  ;;  %v451_v62 = vsub.f32 %v373_v31, %v412_v56  ;;  %v331_v30 = vld [vmem:[%s2969_s28 + $0x118] sm:$0xff] }
 0x107   : > { %v851_v15 = vadd.f32 1.0, %v3566_v4  ;;  %2615 = vpow2.f32 %v596_v28  ;;  %v600_v48 = vmul.f32 1.442695, %v526_v61  ;;  %v946_v37 = vmul.f32 %v3527_v11, %v945_v21 }
 0x108   : > { %v940_v10 = vsel %vm3561_vm14, %v937_v59, %v934_v54  ;;  %v362_v19 = vmax.f32 %v3490_v2, 0.0  ;;  %vm3577_vm15 = vcmp.lt.f32.partialorder %v947_v42, 0.0004427343  ;;  %v955_v35 = vmul.f32 %v3532_v32, %v954_v16 }
 0x109   : > { %2617 = vlog2.f32 %v851_v15  ;;  %v363_v25 = vmax.f32 %v3497_v63, 0.0  ;;  %vm3585_vm0 = vcmp.lt.f32.partialorder %v956_v0, 0.0004427343  ;;  %v401_v11 = vmul.f32 %v323_v3, %v3490_v2 }
 0x10a   : > { %v2608_v49 = vpop.eup %2607  ;;  %2619 = vpow2.f32 %v598_v17  ;;  %v995_v22 = vadd.f32 %v940_v10, %v449_v52  ;;  %v364_v32 = vmax.f32 %v3501_v45, 0.0  ;;  %v854_v31 = vmul.f32 -0.5, %v3566_v4 }
 0x10b   : > { %v2610_v34 = vpop.eup %2609  ;;  %v943_v26 = vmul.f32 0.6931472, %v2608_v49  ;;  %2621 = vpow2.f32 %v600_v48  ;;  %v402_v58 = vmul.f32 %v324_v38, %v3497_v63  ;;  %v403_v6 = vmul.f32 %v325_v9, %v3501_v45  ;;  %v330_v63 = vld [vmem:[%s2969_s28 + $0x110] sm:$0xff] }
 0x10c   : > { %v2612_v12 = vpop.eup %2611  ;;  %v952_v50 = vmul.f32 0.6931472, %v2610_v34  ;;  %v440_v24 = vsub.f32 %v362_v19, %v401_v11  ;;  %v857_v36 = vand.u32 2147483647, %v3566_v4  ;;  %v855_v1 = vadd.f32 1.0, %v854_v31 }
 0x10d   : > { %v2614_v14 = vpop.eup %2613  ;;  %v949_v51 = vsel %vm3577_vm15, %v946_v37, %v943_v26  ;;  %v860_v2 = vadd.f32 1.0, %v2612_v12  ;;  %v863_v46 = vmul.f32 -0.5, %v2612_v12  ;;  %v441_v47 = vsub.f32 %v363_v25, %v402_v58 }
 0x10e   : > { %v958_v33 = vsel %vm3585_vm0, %v955_v35, %v952_v50  ;;  %v996_v13 = vadd.f32 %v949_v51, %v450_v39  ;;  %v869_v53 = vadd.f32 1.0, %v2614_v14  ;;  %v442_v45 = vsub.f32 %v364_v32, %v403_v6 }
 0x10f   : > { %v997_v29 = vadd.f32 %v958_v33, %v451_v62  ;;  %2623 = vlog2.f32 %v860_v2  ;;  %v872_v56 = vmul.f32 -0.5, %v2614_v14  ;;  %v368_v57 = vmax.f32 %v3543_v8, 0.0 }
 0x110   : > { %v1047_v41 = vadd.f32 %v996_v13, %v995_v22  ;;  %2625 = vlog2.f32 %v869_v53  ;;  %v369_v55 = vmax.f32 %v3547_v7, 0.0  ;;  %v370_v20 = vmax.f32 %v3550_v60, 0.0 }
 0x111   : > { %v2616_v18 = vpop.eup %2615  ;;  %v407_v5 = vmul.f32 %v329_v40, %v3543_v8  ;;  %v408_v42 = vmul.f32 %v330_v63, %v3547_v7  ;;  %v409_v43 = vmul.f32 %v331_v30, %v3550_v60  ;;  %v1064_v44 = vlaneseq }
 0x112   : > { %v1048_v59 = vadd.f32 %v1047_v41, %v997_v29  ;;  %v905_v61 = vadd.f32 1.0, %v2616_v18  ;;  %v856_v28 = vmul.f32 %v3566_v4, %v855_v1  ;;  %vm3609_vm1 = vcmp.lt.f32.partialorder %v857_v36, 0.0004427343 }
 0x113   : > { %v2618_v21 = vpop.eup %2617  ;;  %v864_v0 = vadd.f32 1.0, %v863_v46  ;;  %v866_v17 = vand.u32 2147483647, %v2612_v12  ;;  %v873_v8 = vadd.f32 1.0, %v872_v56  ;;  %v875_v7 = vand.u32 2147483647, %v2614_v14 }
 0x114   : > { %v2620_v54 = vpop.eup %2619  ;;  %1049 = vadd.xlane.f32.xlu0 %v1048_v59  ;;  %v853_v16 = vmul.f32 0.6931472, %v2618_v21  ;;  %2627 = vlog2.f32 %v905_v61  ;;  %v446_v62 = vsub.f32 %v368_v57, %v407_v5  ;;  %v908_v60 = vmul.f32 -0.5, %v2616_v18 }
 0x115   : > { %v2622_v15 = vpop.eup %2621  ;;  %v914_v39 = vadd.f32 1.0, %v2620_v54  ;;  %v3613_v48 = vsub.f32 %v369_v55, %v408_v42  ;;  %v3616_v10 = vshrl.u32 %v1064_v44, 7  ;;  %v865_v37 = vmul.f32 %v2612_v12, %v864_v0 }
 0x116   : > { %v923_v3 = vadd.f32 1.0, %v2622_v15  ;;  %v859_v4 = vsel %vm3609_vm1, %v856_v28, %v853_v16  ;;  %v917_v19 = vmul.f32 -0.5, %v2620_v54  ;;  %vm3620_vm2 = vcmp.lt.f32.partialorder %v866_v17, 0.0004427343 }
 0x117   : > { %2629 = vlog2.f32 %v914_v39  ;;  %v874_v35 = vmul.f32 %v2614_v14, %v873_v8  ;;  %v448_v38 = vsub.f32 %v370_v20, %v409_v43  ;;  %v926_v9 = vmul.f32 -0.5, %v2622_v15 }
 0x118   : > { %2631 = vlog2.f32 %v923_v3  ;;  %vm3624_vm3 = vcmp.lt.f32.partialorder %v875_v7, 0.0004427343  ;;  %v909_v27 = vadd.f32 1.0, %v908_v60  ;;  %v2784_v11 = vmov 1966171168  }
 0x119   : > { %v2624_v49 = vpop.eup %2623  ;;  %v1485_v50 = vunpack.c.l.s4 %v2784_v11  ;;  %v986_v22 = vadd.f32 %v859_v4, %v440_v24  ;;  %v911_v32 = vand.u32 2147483647, %v2616_v18  ;;  %v3629_v31 = vsub.s32 0, %v3616_v10 }
 0x11a   : > { %v2626_v25 = vpop.eup %2625  ;;  %v862_v34 = vmul.f32 0.6931472, %v2624_v49  ;;  %v918_v51 = vadd.f32 1.0, %v917_v19  ;;  %v3634_v58 = vsub.s32 1, %v3616_v10  ;;  %v3637_v6 = vsub.s32 2, %v3616_v10 }
 0x11b   : > { %v871_v12 = vmul.f32 0.6931472, %v2626_v25  ;;  %v920_v13 = vand.u32 2147483647, %v2620_v54  ;;  %v927_v53 = vadd.f32 1.0, %v926_v9  ;;  %v910_v24 = vmul.f32 %v2616_v18, %v909_v27 }
 0x11c   : > { %v868_v14 = vsel %vm3620_vm2, %v865_v37, %v862_v34  ;;  %v929_v36 = vand.u32 2147483647, %v2622_v15  ;;  %v1486_v40 = vunpack.c.0.s8 %v1485_v50  ;;  %vm3641_vm4 = vcmp.lt.f32.partialorder %v911_v32, 0.0004427343 }
 0x11d   : > { %v877_v2 = vsel %vm3624_vm3, %v874_v35, %v871_v12  ;;  %v987_v33 = vadd.f32 %v868_v14, %v441_v47  ;;  %v3646_v63 = vsub.s32 3, %v3616_v10  ;;  %v3649_v30 = vsub.s32 4, %v3616_v10 }
 0x11e   : > { %v988_v29 = vadd.f32 %v877_v2, %v442_v45  ;;  %v2628_v41 = vpop.eup %2627  ;;  %v919_v47 = vmul.f32 %v2620_v54, %v918_v51  ;;  %v3652_v57 = vsub.s32 5, %v3616_v10  ;;  %v3655_v45 = vsub.s32 6, %v3616_v10 }
 0x11f   : > { %v1035_v1 = vadd.f32 %v987_v33, %v986_v22  ;;  %v907_v56 = vmul.f32 0.6931472, %v2628_v41  ;;  %vm3657_vm5 = vcmp.lt.f32.partialorder %v920_v13, 0.0004427343  ;;  %v928_v20 = vmul.f32 %v2622_v15, %v927_v53 }
 0x120   : > { %v3662_v5 = vsub.s32 7, %v3616_v10  ;;  %vm3666_vm6 = vcmp.lt.f32.partialorder %v929_v36, 0.0004427343  ;;  %v3671_v16 = vsub.s32 %v1486_v40, %v3616_v10  ;;  %vm255_vm7 = vcmask 843776  }
 0x121   : > { %v2630_v18 = vpop.eup %2629  ;;  %v1036_v59 = vadd.f32 %v1035_v1, %v988_v29  ;;  %v913_v42 = vsel %vm3641_vm4, %v910_v24, %v907_v56  ;;  %vm2167_vm8 = vcmask 130112   ;;  %vm2174_vm9 = vcmask 195712  }
 0x122   : > { %v2632_v21 = vpop.eup %2631  ;;  %v916_v43 = vmul.f32 0.6931472, %v2630_v18  ;;  %v992_v52 = vadd.f32 %v913_v42, %v446_v62  ;;  %vm2181_vm10 = vcmask 261312   ;;  %vm2188_vm11 = vcmask 326912  }
 0x123   : > { %1037 = vadd.xlane.f32.xlu1 %v1036_v59  ;;  %v925_v28 = vmul.f32 0.6931472, %v2632_v21  ;;  %vm2195_vm12 = vcmask 392512   ;;  %vm2202_vm13 = vcmask 458112   ;;  %vm2209_vm14 = vcmask 523712  }
 0x124   : > { %v922_v17 = vsel %vm3657_vm5, %v919_v47, %v916_v43  ;;  %vm2216_vm15 = vcmask 589312   ;;  %vm2223_vm0 = vcmask 654912   ;;  %vm2230_vm1 = vcmask 720512  }
 0x125   : > { %v931_v60 = vsel %vm3666_vm6, %v928_v20, %v925_v28  ;;  %v993_v3 = vadd.f32 %v922_v17, %v3613_v48  ;;  %vm2237_vm2 = vcmask 786112   ;;  %vm2244_vm3 = vcmask 851712  }
 0x126   : > { %v1002_v54 = vpop.xlane.xlu0 %1001  ;;  %v994_v37 = vadd.f32 %v931_v60, %v448_v38 }
 0x127   : > { %v1067_v0 = vrot.slane %v1002_v54, %v3629_v31  ;;  %v1071_v15 = vrot.slane %v1002_v54, %v3634_v58  ;;  %v1075_v8 = vrot.slane %v1002_v54, %v3637_v6  ;;  %v1079_v39 = vrot.slane %v1002_v54, %v3646_v63 }
 0x128   : > { %v1083_v7 = vrot.slane %v1002_v54, %v3649_v30  ;;  %v1087_v62 = vrot.slane %v1002_v54, %v3652_v57  ;;  %v1091_v4 = vrot.slane %v1002_v54, %v3655_v45  ;;  %v1095_v19 = vrot.slane %v1002_v54, %v3662_v5 }
 0x129   : > { %v1480_v49 = vcombine.low %v1067_v0, %v1071_v15  ;;  %v1481_v23 = vcombine.low %v1075_v8, %v1079_v39  ;;  %v1043_v35 = vadd.f32 %v993_v3, %v992_v52  ;;  %v1010_v9 = vpop.xlane.xlu1 %1009 }
 0x12a   : > { %v1482_v25 = vcombine.low %v1083_v7, %v1087_v62  ;;  %v1483_v34 = vcombine.low %v1091_v4, %v1095_v19  ;;  %v1131_v11 = vrot.slane %v1010_v9, %v3629_v31  ;;  %v1135_v12 = vrot.slane %v1010_v9, %v3634_v58 }
 0x12b   : > { %v1490_v26 = vrot.slane %v1480_v49, %v3671_v16  ;;  %v1497_v27 = vrot.slane %v1481_v23, %v3671_v16  ;;  %v1044_v48 = vadd.f32 %v1043_v35, %v994_v37  ;;  %v1139_v38 = vrot.slane %v1010_v9, %v3637_v6 }
 0x12c   : > { %v1504_v50 = vrot.slane %v1482_v25, %v3671_v16  ;;  %v1511_v22 = vrot.slane %v1483_v34, %v3671_v16  ;;  %v1143_v32 = vrot.slane %v1010_v9, %v3646_v63  ;;  %v1147_v14 = vrot.slane %v1010_v9, %v3649_v30 }
 0x12d   : > { %1045 = vadd.xlane.f32.xlu1 %v1044_v48  ;;  %v1151_v51 = vrot.slane %v1010_v9, %v3652_v57  ;;  %v1155_v2 = vrot.slane %v1010_v9, %v3655_v45  ;;  %v1159_v33 = vrot.slane %v1010_v9, %v3662_v5  ;;  %v1578_v13 = vcombine.low %v1131_v11, %v1135_v12 }
 0x12e   : > { %v1579_v53 = vcombine.low %v1139_v38, %v1143_v32  ;;  %v1512_v29 = vcombine.low %v1490_v26, %v1497_v27  ;;  %v1513_v24 = vcombine.low %v1504_v50, %v1511_v22 }
 0x12f   : > { %v1580_v36 = vcombine.low %v1147_v14, %v1151_v51  ;;  %v1581_v40 = vcombine.low %v1155_v2, %v1159_v33  ;;  %v1588_v41 = vrot.slane %v1578_v13, %v3671_v16 }
 0x130   : > { %v1595_v1 = vrot.slane %v1579_v53, %v3671_v16  ;;  %v1520_v47 = vrot.slane %v1512_v29, %v3671_v16  ;;  %v1527_v18 = vrot.slane %v1513_v24, %v3671_v16 }
 0x131   : > { %v1602_v46 = vrot.slane %v1580_v36, %v3671_v16  ;;  %v1609_v56 = vrot.slane %v1581_v40, %v3671_v16 }
 0x132   : > { %v1610_v59 = vcombine.low %v1588_v41, %v1595_v1  ;;  %v1528_v21 = vcombine.low %v1520_v47, %v1527_v18 }
 0x133   : > { %v1611_v55 = vcombine.low %v1602_v46, %v1609_v56 }
 0x134   : > { %v1618_v17 = vrot.slane %v1610_v59, %v3671_v16 }
 0x135   : > { %v1625_v8 = vrot.slane %v1611_v55, %v3671_v16 }
 0x137   : > { %v1006_v20 = vpop.xlane.xlu0 %1005  ;;  %v1626_v49 = vcombine.low %v1618_v17, %v1625_v8 }
 0x138   : > { %v1099_v42 = vrot.slane %v1006_v20, %v3629_v31  ;;  %v1103_v43 = vrot.slane %v1006_v20, %v3634_v58  ;;  %v1107_v61 = vrot.slane %v1006_v20, %v3637_v6  ;;  %v1111_v54 = vrot.slane %v1006_v20, %v3646_v63 }
 0x139   : > { %v1115_v28 = vrot.slane %v1006_v20, %v3649_v30  ;;  %v1119_v52 = vrot.slane %v1006_v20, %v3652_v57  ;;  %v1123_v0 = vrot.slane %v1006_v20, %v3655_v45  ;;  %v1127_v15 = vrot.slane %v1006_v20, %v3662_v5 }
 0x13a   : > { %v1529_v39 = vcombine.low %v1099_v42, %v1103_v43  ;;  %v1530_v7 = vcombine.low %v1107_v61, %v1111_v54 }
 0x13b   : > { %v1531_v60 = vcombine.low %v1115_v28, %v1119_v52  ;;  %v1532_v3 = vcombine.low %v1123_v0, %v1127_v15 }
 0x13c   : > { %v1539_v62 = vrot.slane %v1529_v39, %v3671_v16  ;;  %v1546_v4 = vrot.slane %v1530_v7, %v3671_v16 }
 0x13d   : > { %v1553_v37 = vrot.slane %v1531_v60, %v3671_v16  ;;  %v1560_v19 = vrot.slane %v1532_v3, %v3671_v16 }
 0x13e   : > { %2118 = vperm.xlu1 %2475, %v1528_v21   ;;  %v1561_v23 = vcombine.low %v1539_v62, %v1546_v4 }
 0x13f   : > { %v1562_v35 = vcombine.low %v1553_v37, %v1560_v19 }
 0x140   : > { %v1569_v9 = vrot.slane %v1561_v23, %v3671_v16 }
 0x141   : > { %v1576_v25 = vrot.slane %v1562_v35, %v3671_v16 }
 0x142   : > { %2124 = vperm.xlu1 %2475, %v1626_v49  }
 0x143   : > { %v1577_v34 = vcombine.low %v1569_v9, %v1576_v25 }
 0x145   : > { %v1014_v26 = vpop.xlane.xlu1 %1013  ;;  %2121 = vperm.xlu0 %2476, %v1577_v34  }
 0x146   : > { %v1163_v27 = vrot.slane %v1014_v26, %v3629_v31  ;;  %v1167_v11 = vrot.slane %v1014_v26, %v3634_v58  ;;  %v1171_v48 = vrot.slane %v1014_v26, %v3637_v6  ;;  %v1175_v50 = vrot.slane %v1014_v26, %v3646_v63 }
 0x147   : > { %v1179_v12 = vrot.slane %v1014_v26, %v3649_v30  ;;  %v1183_v38 = vrot.slane %v1014_v26, %v3652_v57  ;;  %v1187_v22 = vrot.slane %v1014_v26, %v3655_v45  ;;  %v1191_v32 = vrot.slane %v1014_v26, %v3662_v5 }
 0x148   : > { %v1627_v14 = vcombine.low %v1163_v27, %v1167_v11  ;;  %v1628_v51 = vcombine.low %v1171_v48, %v1175_v50 }
 0x149   : > { %v1629_v2 = vcombine.low %v1179_v12, %v1183_v38  ;;  %v1630_v33 = vcombine.low %v1187_v22, %v1191_v32 }
 0x14a   : > { %v1637_v13 = vrot.slane %v1627_v14, %v3671_v16  ;;  %v1644_v53 = vrot.slane %v1628_v51, %v3671_v16 }
 0x14b   : > { %v1651_v29 = vrot.slane %v1629_v2, %v3671_v16  ;;  %v1658_v24 = vrot.slane %v1630_v33, %v3671_v16 }
 0x14c   : > { %v1659_v36 = vcombine.low %v1637_v13, %v1644_v53 }
 0x14d   : > { %v1660_v40 = vcombine.low %v1651_v29, %v1658_v24 }
 0x14e   : > { %v1667_v41 = vrot.slane %v1659_v36, %v3671_v16 }
 0x14f   : > { %v1674_v1 = vrot.slane %v1660_v40, %v3671_v16 }
 0x151   : > { %v1675_v46 = vcombine.low %v1667_v41, %v1674_v1  ;;  %v1018_v56 = vpop.xlane.xlu0 %1017 }
 0x152   : > { %v1195_v47 = vrot.slane %v1018_v56, %v3629_v31  ;;  %v1199_v18 = vrot.slane %v1018_v56, %v3634_v58  ;;  %v1203_v59 = vrot.slane %v1018_v56, %v3637_v6  ;;  %v1207_v55 = vrot.slane %v1018_v56, %v3646_v63 }
 0x153   : > { %2127 = vperm.xlu1 %2475, %v1675_v46   ;;  %v1211_v20 = vrot.slane %v1018_v56, %v3649_v30  ;;  %v1215_v21 = vrot.slane %v1018_v56, %v3652_v57  ;;  %v1219_v42 = vrot.slane %v1018_v56, %v3655_v45  ;;  %v1223_v43 = vrot.slane %v1018_v56, %v3662_v5 }
 0x154   : > { %v1676_v61 = vcombine.low %v1195_v47, %v1199_v18  ;;  %v1677_v54 = vcombine.low %v1203_v59, %v1207_v55 }
 0x155   : > { %v1678_v28 = vcombine.low %v1211_v20, %v1215_v21  ;;  %v1679_v52 = vcombine.low %v1219_v42, %v1223_v43 }
 0x156   : > { %v1686_v0 = vrot.slane %v1676_v61, %v3671_v16  ;;  %v1693_v15 = vrot.slane %v1677_v54, %v3671_v16 }
 0x157   : > { %v1700_v17 = vrot.slane %v1678_v28, %v3671_v16  ;;  %v1707_v8 = vrot.slane %v1679_v52, %v3671_v16 }
 0x158   : > { %v1708_v39 = vcombine.low %v1686_v0, %v1693_v15 }
 0x159   : > { %v1709_v7 = vcombine.low %v1700_v17, %v1707_v8 }
 0x15a   : > { %v1716_v60 = vrot.slane %v1708_v39, %v3671_v16 }
 0x15b   : > { %v1723_v3 = vrot.slane %v1709_v7, %v3671_v16 }
 0x15d   : > { %v1724_v62 = vcombine.low %v1716_v60, %v1723_v3 }
 0x15f   : > { %2130 = vperm.xlu1 %2475, %v1724_v62  }
 0x163   : > { %v1026_v4 = vpop.xlane.xlu0 %1025 }
 0x164   : > { %v1259_v37 = vrot.slane %v1026_v4, %v3629_v31  ;;  %v1263_v19 = vrot.slane %v1026_v4, %v3634_v58  ;;  %v1267_v49 = vrot.slane %v1026_v4, %v3637_v6  ;;  %v1271_v23 = vrot.slane %v1026_v4, %v3646_v63 }
 0x165   : > { %v1275_v35 = vrot.slane %v1026_v4, %v3649_v30  ;;  %v1279_v9 = vrot.slane %v1026_v4, %v3652_v57  ;;  %v1283_v25 = vrot.slane %v1026_v4, %v3655_v45  ;;  %v1287_v34 = vrot.slane %v1026_v4, %v3662_v5 }
 0x166   : > { %v1774_v26 = vcombine.low %v1259_v37, %v1263_v19  ;;  %v1775_v27 = vcombine.low %v1267_v49, %v1271_v23 }
 0x167   : > { %v1776_v11 = vcombine.low %v1275_v35, %v1279_v9  ;;  %v1777_v48 = vcombine.low %v1283_v25, %v1287_v34 }
 0x168   : > { %v1784_v12 = vrot.slane %v1774_v26, %v3671_v16  ;;  %v1791_v38 = vrot.slane %v1775_v27, %v3671_v16 }
 0x169   : > { %v1022_v50 = vpop.xlane.xlu1 %1021  ;;  %v1798_v22 = vrot.slane %v1776_v11, %v3671_v16  ;;  %v1805_v32 = vrot.slane %v1777_v48, %v3671_v16 }
 0x16a   : > { %v1227_v14 = vrot.slane %v1022_v50, %v3629_v31  ;;  %v1231_v51 = vrot.slane %v1022_v50, %v3634_v58  ;;  %v1235_v2 = vrot.slane %v1022_v50, %v3637_v6  ;;  %v1239_v33 = vrot.slane %v1022_v50, %v3646_v63 }
 0x16b   : > { %v1243_v13 = vrot.slane %v1022_v50, %v3649_v30  ;;  %v1247_v53 = vrot.slane %v1022_v50, %v3652_v57  ;;  %v1251_v29 = vrot.slane %v1022_v50, %v3655_v45  ;;  %v1255_v24 = vrot.slane %v1022_v50, %v3662_v5 }
 0x16c   : > { %v1725_v36 = vcombine.low %v1227_v14, %v1231_v51  ;;  %v1726_v40 = vcombine.low %v1235_v2, %v1239_v33  ;;  %v1806_v59 = vcombine.low %v1784_v12, %v1791_v38  ;;  %v1807_v55 = vcombine.low %v1798_v22, %v1805_v32 }
 0x16d   : > { %v1727_v41 = vcombine.low %v1243_v13, %v1247_v53  ;;  %v1728_v1 = vcombine.low %v1251_v29, %v1255_v24 }
 0x16e   : > { %v1735_v46 = vrot.slane %v1725_v36, %v3671_v16  ;;  %v1742_v56 = vrot.slane %v1726_v40, %v3671_v16  ;;  %v1814_v61 = vrot.slane %v1806_v59, %v3671_v16  ;;  %v1821_v54 = vrot.slane %v1807_v55, %v3671_v16 }
 0x16f   : > { %v1749_v47 = vrot.slane %v1727_v41, %v3671_v16  ;;  %v1756_v18 = vrot.slane %v1728_v1, %v3671_v16 }
 0x170   : > { %v1757_v20 = vcombine.low %v1735_v46, %v1742_v56  ;;  %v1822_v52 = vcombine.low %v1814_v61, %v1821_v54 }
 0x171   : > { %v1758_v21 = vcombine.low %v1749_v47, %v1756_v18 }
 0x172   : > { %v1765_v42 = vrot.slane %v1757_v20, %v3671_v16 }
 0x173   : > { %v1772_v43 = vrot.slane %v1758_v21, %v3671_v16 }
 0x175   : > { %v1773_v28 = vcombine.low %v1765_v42, %v1772_v43 }
 0x177   : > { %2133 = vperm.xlu1 %2475, %v1773_v28  }
 0x17a   : > { %v1034_v0 = vpop.xlane.xlu0 %1033 }
 0x17b   : > { %2136 = vperm.xlu1 %2475, %v1822_v52   ;;  %v1323_v17 = vrot.slane %v1034_v0, %v3629_v31  ;;  %v1327_v8 = vrot.slane %v1034_v0, %v3634_v58  ;;  %v1331_v39 = vrot.slane %v1034_v0, %v3637_v6  ;;  %v1335_v7 = vrot.slane %v1034_v0, %v3646_v63 }
 0x17c   : > { %v1339_v25 = vrot.slane %v1034_v0, %v3649_v30  ;;  %v1343_v34 = vrot.slane %v1034_v0, %v3652_v57  ;;  %v1347_v11 = vrot.slane %v1034_v0, %v3655_v45  ;;  %v1351_v48 = vrot.slane %v1034_v0, %v3662_v5 }
 0x17d   : > { %v1872_v14 = vcombine.low %v1323_v17, %v1327_v8  ;;  %v1873_v2 = vcombine.low %v1331_v39, %v1335_v7 }
 0x17e   : > { %v1874_v33 = vcombine.low %v1339_v25, %v1343_v34  ;;  %v1875_v13 = vcombine.low %v1347_v11, %v1351_v48 }
 0x17f   : > { %v1882_v24 = vrot.slane %v1872_v14, %v3671_v16  ;;  %v1889_v41 = vrot.slane %v1873_v2, %v3671_v16 }
 0x180   : > { %v1896_v1 = vrot.slane %v1874_v33, %v3671_v16  ;;  %v1903_v46 = vrot.slane %v1875_v13, %v3671_v16 }
 0x181   : > { %v1904_v8 = vcombine.low %v1882_v24, %v1889_v41 }
 0x182   : > { %v1905_v39 = vcombine.low %v1896_v1, %v1903_v46 }
 0x186   : > { %v1042_v15 = vpop.xlane.xlu0 %1041 }
 0x187   : > { %v1387_v60 = vrot.slane %v1042_v15, %v3629_v31  ;;  %v1391_v3 = vrot.slane %v1042_v15, %v3634_v58  ;;  %v1395_v62 = vrot.slane %v1042_v15, %v3637_v6  ;;  %v1399_v4 = vrot.slane %v1042_v15, %v3646_v63 }
 0x188   : > { %v1403_v37 = vrot.slane %v1042_v15, %v3649_v30  ;;  %v1407_v19 = vrot.slane %v1042_v15, %v3652_v57  ;;  %v1411_v49 = vrot.slane %v1042_v15, %v3655_v45  ;;  %v1415_v23 = vrot.slane %v1042_v15, %v3662_v5 }
 0x189   : > { %v1970_v35 = vcombine.low %v1387_v60, %v1391_v3  ;;  %v1971_v9 = vcombine.low %v1395_v62, %v1399_v4  ;;  %v1912_v4 = vrot.slane %v1904_v8, %v3671_v16 }
 0x18a   : > { %v1972_v26 = vcombine.low %v1403_v37, %v1407_v19  ;;  %v1973_v27 = vcombine.low %v1411_v49, %v1415_v23  ;;  %v1919_v37 = vrot.slane %v1905_v39, %v3671_v16 }
 0x18b   : > { %v1980_v50 = vrot.slane %v1970_v35, %v3671_v16  ;;  %v1987_v12 = vrot.slane %v1971_v9, %v3671_v16 }
 0x18c   : > { %v1994_v38 = vrot.slane %v1972_v26, %v3671_v16  ;;  %v2001_v22 = vrot.slane %v1973_v27, %v3671_v16  ;;  %v1920_v49 = vcombine.low %v1912_v4, %v1919_v37 }
 0x18d   : > { %v2002_v32 = vcombine.low %v1980_v50, %v1987_v12 }
 0x18e   : > { %v2003_v51 = vcombine.low %v1994_v38, %v2001_v22 }
 0x18f   : > { %v2010_v53 = vrot.slane %v2002_v32, %v3671_v16 }
 0x190   : > { %v2017_v29 = vrot.slane %v2003_v51, %v3671_v16 }
 0x191   : > { %v1030_v36 = vpop.xlane.xlu1 %1029 }
 0x192   : > { %v2018_v40 = vcombine.low %v2010_v53, %v2017_v29  ;;  %v1291_v56 = vrot.slane %v1030_v36, %v3629_v31  ;;  %v1295_v47 = vrot.slane %v1030_v36, %v3634_v58  ;;  %v1299_v18 = vrot.slane %v1030_v36, %v3637_v6 }
 0x193   : > { %v1303_v59 = vrot.slane %v1030_v36, %v3646_v63  ;;  %v1307_v55 = vrot.slane %v1030_v36, %v3649_v30  ;;  %v1311_v20 = vrot.slane %v1030_v36, %v3652_v57  ;;  %v1315_v21 = vrot.slane %v1030_v36, %v3655_v45 }
 0x194   : > { %2148 = vperm.xlu0 %2476, %v2018_v40   ;;  %v1319_v42 = vrot.slane %v1030_v36, %v3662_v5  ;;  %v1823_v43 = vcombine.low %v1291_v56, %v1295_v47 }
 0x195   : > { %v1824_v61 = vcombine.low %v1299_v18, %v1303_v59  ;;  %v1825_v54 = vcombine.low %v1307_v55, %v1311_v20 }
 0x196   : > { %v1826_v28 = vcombine.low %v1315_v21, %v1319_v42  ;;  %v1833_v52 = vrot.slane %v1823_v43, %v3671_v16 }
 0x197   : > { %v1840_v0 = vrot.slane %v1824_v61, %v3671_v16  ;;  %v1847_v15 = vrot.slane %v1825_v54, %v3671_v16 }
 0x198   : > { %v1854_v17 = vrot.slane %v1826_v28, %v3671_v16 }
 0x199   : > { %v1855_v7 = vcombine.low %v1833_v52, %v1840_v0 }
 0x19a   : > { %v1856_v60 = vcombine.low %v1847_v15, %v1854_v17 }
 0x19b   : > { %v1863_v3 = vrot.slane %v1855_v7, %v3671_v16 }
 0x19c   : > { %v1870_v62 = vrot.slane %v1856_v60, %v3671_v16 }
 0x19e   : > { %v1871_v19 = vcombine.low %v1863_v3, %v1870_v62 }
 0x1a0   : > { %2139 = vperm.xlu1 %2475, %v1871_v19  }
 0x1a1   : > { %v1050_v23 = vpop.xlane.xlu0 %1049 }
 0x1a2   : > { %v1451_v35 = vrot.slane %v1050_v23, %v3629_v31  ;;  %v1455_v9 = vrot.slane %v1050_v23, %v3634_v58  ;;  %v1459_v25 = vrot.slane %v1050_v23, %v3637_v6  ;;  %v1463_v34 = vrot.slane %v1050_v23, %v3646_v63 }
 0x1a3   : > { %v1467_v26 = vrot.slane %v1050_v23, %v3649_v30  ;;  %v1471_v27 = vrot.slane %v1050_v23, %v3652_v57  ;;  %v1475_v11 = vrot.slane %v1050_v23, %v3655_v45  ;;  %v1479_v48 = vrot.slane %v1050_v23, %v3662_v5 }
 0x1a4   : > { %2142 = vperm.xlu1 %2475, %v1920_v49   ;;  %v2068_v50 = vcombine.low %v1451_v35, %v1455_v9  ;;  %v2069_v12 = vcombine.low %v1459_v25, %v1463_v34 }
 0x1a5   : > { %v2070_v38 = vcombine.low %v1467_v26, %v1471_v27  ;;  %v2071_v22 = vcombine.low %v1475_v11, %v1479_v48  ;;  %v2785_v26 = vmov 0.0  }
 0x1a6   : > { %v2078_v32 = vrot.slane %v2068_v50, %v3671_v16  ;;  %v2085_v14 = vrot.slane %v2069_v12, %v3671_v16  ;;  %256 = vst.msk [vmem:[#allocation2] sm:$0x1] %vm255_vm7, %v2785_v26 }
 0x1a7   : > { %v2092_v51 = vrot.slane %v2070_v38, %v3671_v16  ;;  %v2099_v2 = vrot.slane %v2071_v22, %v3671_v16  ;;  %v2157_v22 = vand.u32 127, %v1064_v44 }
 0x1a8   : > { %v2100_v33 = vcombine.low %v2078_v32, %v2085_v14 }
 0x1a9   : > { %v2101_v13 = vcombine.low %v2092_v51, %v2099_v2  ;;  %v2162_v32 = vadd.s32 4294967288, %v2157_v22  ;;  %v2169_v14 = vadd.s32 4294967280, %v2157_v22 }
 0x1aa   : > { %v2108_v53 = vrot.slane %v2100_v33, %v3671_v16  ;;  %v2176_v33 = vadd.s32 4294967272, %v2157_v22 }
 0x1ab   : > { %v2115_v29 = vrot.slane %v2101_v13, %v3671_v16  ;;  %v2165_v2 = vsub.s32 %v2162_v32, %v3616_v10 }
 0x1ad   : > { %v2116_v24 = vcombine.low %v2108_v53, %v2115_v29  ;;  %v2183_v53 = vadd.s32 4294967264, %v2157_v22  ;;  %v2160_v29 = vsub.s32 %v2157_v22, %v3616_v10 }
 0x1af   : > { %2154 = vperm.xlu0 %2476, %v2116_v24   ;;  %v2190_v24 = vadd.s32 4294967256, %v2157_v22  ;;  %v2186_v44 = vsub.s32 %v2183_v53, %v3616_v10 }
 0x1b0   : > { %v1038_v36 = vpop.xlane.xlu1 %1037 }
 0x1b1   : > { %v1355_v40 = vrot.slane %v1038_v36, %v3629_v31  ;;  %v1359_v41 = vrot.slane %v1038_v36, %v3634_v58  ;;  %v1363_v1 = vrot.slane %v1038_v36, %v3637_v6  ;;  %v1367_v46 = vrot.slane %v1038_v36, %v3646_v63 }
 0x1b2   : > { %v1371_v56 = vrot.slane %v1038_v36, %v3649_v30  ;;  %v1375_v47 = vrot.slane %v1038_v36, %v3652_v57  ;;  %v1379_v18 = vrot.slane %v1038_v36, %v3655_v45  ;;  %v1383_v59 = vrot.slane %v1038_v36, %v3662_v5 }
 0x1b3   : > { %v1921_v55 = vcombine.low %v1355_v40, %v1359_v41  ;;  %v1922_v20 = vcombine.low %v1363_v1, %v1367_v46  ;;  %v2172_v36 = vsub.s32 %v2169_v14, %v3616_v10  ;;  %v2197_v40 = vadd.s32 4294967248, %v2157_v22 }
 0x1b4   : > { %v1923_v21 = vcombine.low %v1371_v56, %v1375_v47  ;;  %v1924_v42 = vcombine.low %v1379_v18, %v1383_v59  ;;  %v2179_v1 = vsub.s32 %v2176_v33, %v3616_v10  ;;  %v2204_v46 = vadd.s32 4294967240, %v2157_v22 }
 0x1b5   : > { %v1931_v43 = vrot.slane %v1921_v55, %v3671_v16  ;;  %v1938_v61 = vrot.slane %v1922_v20, %v3671_v16  ;;  %v2211_v56 = vadd.s32 4294967232, %v2157_v22  ;;  %v2193_v59 = vsub.s32 %v2190_v24, %v3616_v10 }
 0x1b6   : > { %v1945_v54 = vrot.slane %v1923_v21, %v3671_v16  ;;  %v1952_v28 = vrot.slane %v1924_v42, %v3671_v16  ;;  %v2218_v55 = vadd.s32 4294967224, %v2157_v22  ;;  %v2200_v21 = vsub.s32 %v2197_v40, %v3616_v10 }
 0x1b7   : > { %v1953_v52 = vcombine.low %v1931_v43, %v1938_v61  ;;  %v2207_v61 = vsub.s32 %v2204_v46, %v3616_v10 }
 0x1b8   : > { %v1954_v15 = vcombine.low %v1945_v54, %v1952_v28  ;;  %v2214_v28 = vsub.s32 %v2211_v56, %v3616_v10 }
 0x1b9   : > { %v1961_v17 = vrot.slane %v1953_v52, %v3671_v16 }
 0x1ba   : > { %v1046_v0 = vpop.xlane.xlu1 %1045  ;;  %v1968_v60 = vrot.slane %v1954_v15, %v3671_v16 }
 0x1bb   : > { %v1419_v8 = vrot.slane %v1046_v0, %v3629_v31  ;;  %v1423_v39 = vrot.slane %v1046_v0, %v3634_v58  ;;  %v1427_v7 = vrot.slane %v1046_v0, %v3637_v6  ;;  %v1431_v3 = vrot.slane %v1046_v0, %v3646_v63 }
 0x1bc   : > { %v1435_v62 = vrot.slane %v1046_v0, %v3649_v30  ;;  %v1439_v4 = vrot.slane %v1046_v0, %v3652_v57  ;;  %v1443_v37 = vrot.slane %v1046_v0, %v3655_v45  ;;  %v1447_v19 = vrot.slane %v1046_v0, %v3662_v5 }
 0x1bd   : > { %v2019_v49 = vcombine.low %v1419_v8, %v1423_v39  ;;  %v1969_v23 = vcombine.low %v1961_v17, %v1968_v60  ;;  %v2020_v35 = vcombine.low %v1427_v7, %v1431_v3  ;;  %v2221_v0 = vsub.s32 %v2218_v55, %v3616_v10 }
 0x1be   : > { %v2021_v31 = vcombine.low %v1435_v62, %v1439_v4  ;;  %v2022_v9 = vcombine.low %v1443_v37, %v1447_v19  ;;  %v2119_v27 = vpop.permute.xlu1 %2118  ;;  %v2225_v8 = vadd.s32 4294967216, %v2157_v22  ;;  %v2232_v62 = vadd.s32 4294967208, %v2157_v22 }
 0x1bf   : > { %v2029_v58 = vrot.slane %v2019_v49, %v3671_v16  ;;  %2145 = vperm.xlu1 %2475, %v1969_v23   ;;  %v2036_v6 = vrot.slane %v2020_v35, %v3671_v16  ;;  %v2161_v18 = vrot.slane %v2119_v27, %v2160_v29  ;;  %v2239_v37 = vadd.s32 4294967200, %v2157_v22 }
 0x1c0   : > { %v2043_v63 = vrot.slane %v2021_v31, %v3671_v16  ;;  %v2050_v30 = vrot.slane %v2022_v9, %v3671_v16  ;;  %v2228_v31 = vsub.s32 %v2225_v8, %v3616_v10 }
 0x1c1   : > { %v2051_v25 = vcombine.low %v2029_v58, %v2036_v6  ;;  %v2235_v58 = vsub.s32 %v2232_v62, %v3616_v10  ;;  %v2242_v6 = vsub.s32 %v2239_v37, %v3616_v10  ;;  %v998_v10 = vld [vmem:[#allocation2] sm:$0x1] }
 0x1c2   : > { %v2052_v57 = vcombine.low %v2043_v63, %v2050_v30  ;;  %v2125_v11 = vpop.permute.xlu1 %2124 }
 0x1c3   : > { %v2059_v45 = vrot.slane %v2051_v25, %v3671_v16  ;;  %v2173_v20 = vrot.slane %v2125_v11, %v2172_v36 }
 0x1c4   : > { %v2066_v5 = vrot.slane %v2052_v57, %v3671_v16  ;;  %v2122_v13 = vpop.permute.xlu0 %2121 }
 0x1c5   : > { %v2166_v41 = vrot.slane %v2122_v13, %v2165_v2 }
 0x1c6   : > { %v2067_v34 = vcombine.low %v2059_v45, %v2066_v5 }
 0x1c7   : > { %v2168_v42 = vsel %vm2167_vm8, %v2166_v41, %v2161_v18 }
 0x1c8   : > { %2151 = vperm.xlu1 %2475, %v2067_v34   ;;  %v2175_v15 = vsel %vm2174_vm9, %v2173_v20, %v2168_v42 }
 0x1d2   : > { %v2128_v48 = vpop.permute.xlu1 %2127 }
 0x1d3   : > { %v2180_v43 = vrot.slane %v2128_v48, %v2179_v1 }
 0x1d5   : > { %v2182_v7 = vsel %vm2181_vm10, %v2180_v43, %v2175_v15 }
 0x1de   : > { %v2131_v50 = vpop.permute.xlu1 %2130 }
 0x1df   : > { %v2187_v54 = vrot.slane %v2131_v50, %v2186_v44 }
 0x1e1   : > { %v2189_v4 = vsel %vm2188_vm11, %v2187_v54, %v2182_v7 }
 0x1f6   : > { %v2134_v12 = vpop.permute.xlu1 %2133 }
 0x1f7   : > { %v2194_v52 = vrot.slane %v2134_v12, %v2193_v59 }
 0x1f9   : > { %v2196_v49 = vsel %vm2195_vm12, %v2194_v52, %v2189_v4 }
 0x1fa   : > { %v2137_v38 = vpop.permute.xlu1 %2136 }
 0x1fb   : > { %v2201_v17 = vrot.slane %v2137_v38, %v2200_v21 }
 0x1fd   : > { %v2203_v35 = vsel %vm2202_vm13, %v2201_v17, %v2196_v49 }
 0x213   : > { %v2149_v60 = vpop.permute.xlu0 %2148 }
 0x214   : > { %v2229_v57 = vrot.slane %v2149_v60, %v2228_v31 }
 0x21f   : > { %v2140_v51 = vpop.permute.xlu1 %2139 }
 0x220   : > { %v2208_v3 = vrot.slane %v2140_v51, %v2207_v61 }
 0x222   : > { %v2210_v9 = vsel %vm2209_vm14, %v2208_v3, %v2203_v35 }
 0x223   : > { %v2143_v47 = vpop.permute.xlu1 %2142 }
 0x224   : > { %v2215_v19 = vrot.slane %v2143_v47, %v2214_v28 }
 0x226   : > { %v2217_v63 = vsel %vm2216_vm15, %v2215_v19, %v2210_v9 }
 0x22e   : > { %v2155_v30 = vpop.permute.xlu0 %2154 }
 0x22f   : > { %v2243_v34 = vrot.slane %v2155_v30, %v2242_v6 }
 0x23e   : > { %v2146_v39 = vpop.permute.xlu1 %2145 }
 0x23f   : > { %v2222_v23 = vrot.slane %v2146_v39, %v2221_v0 }
 0x241   : > { %v2224_v25 = vsel %vm2223_vm0, %v2222_v23, %v2217_v63 }
 0x242   : > { %v2231_v26 = vsel %vm2230_vm1, %v2229_v57, %v2224_v25 }
 0x247   : > { %v2152_v45 = vpop.permute.xlu1 %2151 }
 0x248   : > { %v2236_v5 = vrot.slane %v2152_v45, %v2235_v58 }
 0x24a   : > { %v2238_v27 = vsel %vm2237_vm2, %v2236_v5, %v2231_v26 }
 0x24b   : > { %v2245_v11 = vsel %vm2244_vm3, %v2243_v34, %v2238_v27 }
 0x24c   : > { %v2252_v48 = vrot.slane %v2245_v11, %v3671_v16 }
 0x24e   : > { %v2259_v50 = vrot.slane %v2252_v48, %v3671_v16 }
 0x250   : > { %v2261_v12 = vadd.f32 %v2259_v50, %v998_v10 }
 0x252   : > { %2263 = vst.msk [vmem:[#allocation2] sm:$0x1] %vm255_vm7, %v2261_v12 }
 0x259   : > { %v2267_v38 = vld [vmem:[#allocation2] sm:$0x1] }
 0x25a   : > { %v2268_v22 = vmul.f32 0.0026041667, %v2267_v38 }
 0x25c   : > { %2269 = vst.msk [vmem:[%s236_s3] sm:$0x1] %vm255_vm7, %v2268_v22 }
 0x25d   : > { %2702 = shalt.err (!%p2699_p11)
}
 0x25e   : > { %s2703_s19 = scalar_lea.hbm %s3883_s18, 16  ;;  %s2707_s4 = scalar_lea.hbm %s3935_s2, 32 }
 0x25f   : > { %p2704_p12 = scmp.ne.s32.totalorder %s3883_s18, %s2703_s19  ;;  %p2708_p0 = scmp.lt.u32.totalorder %s3883_s18, %s3935_s2 }
 0x260   : > { %p2709_p13 = scmp.lt.u32.totalorder %s2707_s4, %s2703_s19  ;;  %p2711_p8 = scmp.lt.u32.totalorder %s2703_s19, %s3883_s18 }
 0x261   : > { %p2705_p3 = pnand %p2704_p12, %p4020_p4 }
 0x262   : > { %p2710_p1 = por %p2709_p13, %p2708_p0 }
 0x263   : > { %p2706_p10 = pneg %p2705_p3 }
 0x264   : > { %p2712_p2 = por %p2711_p8, %p2710_p1 }
 0x266   : > { %p2713_p5 = pnand %p2712_p2, %p2706_p10 }
 0x268   : > { %2716 = shalt.err (!%p2713_p5)
}
 0x269   : > { %2411 = dma.vmem_to_hbm [thread:$0]  (%p4020_p4), %s3885_s30, 16, %s3883_s18, %s2271_s20  }
 0x26a PF: > { %s2295_s26 = sand.u32 1, %s2755_s9   ;;  %p4021_p6 = scmp.ne.s32.totalorder %s3941_s24, 0 }
 0x26b   : > { %p4022_p7 = scmp.ge.s32.totalorder %s2775_s14, 2  ;;  %s2296_s28 = scalar_lea.sflag [#allocation5], %s2295_s26 }
 0x26d   : > { %p2414_p9 = pnand %p4022_p7, %p4021_p6 }
 0x26f   : > { %2750 = dma.done.wait (!%p2414_p9), %s2296_s28, 16  }
 0x270   : > { %2752 = vsyncadd (!%p2414_p9), %s2296_s28, 4294967280  ;;  %s21_s14 = sadd.s32 1, %s2775_s14   ;;  %s4023_s9 = smov %s2759_s10 }
 0x271   : > { %p18_p11 = scmp.ge.s32.totalorder %s21_s14, 4   ;;  %s4024_s10 = smov %s2763_s11 }
 0x272   : > { %s4025_s11 = smov %s2858_s23  ;;  %s4026_s12 = smov %s2771_s13 }
 0x273   : > { %s4027_s13 = smov %s4029_s17  ;;  %20 = sbr.rel (!%p18_p11) target bundleno = 8 (0x8), region = 94 }
 0x27a   :  { %2300 = vsyncpa [#allocation4], 1 }
 0x27b   :  { %2302 = vsyncpa [#allocation4 + $0x1], 1 }
 0x27c   :  { %2303 = vsyncpa [#allocation7], 1 }
 0x27d   :  { %2305 = vsyncpa [#allocation7 + $0x1], 1 }
 0x27e   :  { %2306 = vsyncpa [#allocation5], 1 }
 0x27f   :  { %2308 = vsyncpa [#allocation5 + $0x1], 1 }

</bundles_post_ra>
